<compile_context>
chip_gen: v7x
topology: tpu7x:2x2x1
jax: 0.10.0
libtpu: 0.0.40
codegen_flags: <defaults>
</compile_context>

<pallas_src>
from functools import partial

import numpy as np
import jax
import jax.numpy as jnp
from jax.experimental import pallas as pl
from jax.experimental.pallas import tpu as pltpu


# ----------------------------- kernel helpers -------------------------------

def _layer_norm(x, g, b, eps=1e-5):
    # PyTorch LayerNorm: biased variance, eps inside sqrt. Kept in f32.
    mu = jnp.mean(x, axis=-1, keepdims=True)
    xc = x - mu
    var = jnp.mean(xc * xc, axis=-1, keepdims=True)
    return xc * jax.lax.rsqrt(var + eps) * g + b


# --------------------------------- kernel -----------------------------------

def coordination_transformer_kernel(
    x_ref, posb_ref, win_ref,
    qkvw_ref, qkvb_ref, owh_ref, ff1w_ref, ff2w_ref, lvec_ref,
    hvec_ref, fc1w_ref, fc2w_ref,
    out_ref,
    *, num_layers, nhead,
):
    S = x_ref.shape[1]
    D = win_ref.shape[1]
    H = nhead

    # input projection (bias already folded into pos encoding on the host)
    x = x_ref[0].astype(jnp.bfloat16)                       # (S, Din)
    h = jnp.dot(x, win_ref[...], preferred_element_type=jnp.float32)
    h = h + posb_ref[...]                                   # (S, D), f32

    for l in range(num_layers):                             # static unroll
        lv = lvec_ref[l]                                    # (8, 4D) f32
        ff1b = lv[0:1, :]                                   # (1, 4D)
        ob   = lv[1:2, 0:D]
        ln1g = lv[2:3, 0:D]; ln1b = lv[3:4, 0:D]
        ln2g = lv[4:5, 0:D]; ln2b = lv[5:6, 0:D]
        ff2b = lv[6:7, 0:D]

        hb = h.astype(jnp.bfloat16)                         # (S, D)

        # -------- fused multi-head self attention (dropout = identity) ------
        # per-head q/k/v via one batched matmul; Q weights pre-scaled 1/sqrt(Dh)
        hb3 = jnp.broadcast_to(hb[None], (3 * H, S, D))     # (3H, S, D)
        qkv = jnp.einsum('hsd,hfd->hsf', hb3, qkvw_ref[l],
                         preferred_element_type=jnp.float32)
        qkv = qkv + qkvb_ref[l]                             # (3H, S, Dh)
        qh = qkv[0:H].astype(jnp.bfloat16)                  # (H, S, Dh)
        kh = qkv[H:2 * H].astype(jnp.bfloat16)
        vh = qkv[2 * H:3 * H].astype(jnp.bfloat16)

        s = jnp.einsum('hqd,hkd->hqk', qh, kh,
                       preferred_element_type=jnp.float32)  # (H, S, S)
        m = jnp.max(s, axis=-1, keepdims=True)
        p = jnp.exp(s - m)
        p = p * pl.reciprocal(jnp.sum(p, axis=-1, keepdims=True), approx=True)
        ctx = jnp.einsum('hqk,hkd->hqd', p.astype(jnp.bfloat16), vh,
                         preferred_element_type=jnp.float32)  # (H, S, Dh)

        # per-head output projection summed over heads == concat(ctx) @ Wo
        attn = jnp.einsum('hqd,hdf->hqf', ctx.astype(jnp.bfloat16), owh_ref[l],
                          preferred_element_type=jnp.float32)  # (H, S, D)
        attn = jnp.sum(attn, axis=0) + ob                   # (S, D)

        h = _layer_norm(h + attn, ln1g, ln1b)

        # ---------------------------- feed forward --------------------------
        ff = jnp.dot(h.astype(jnp.bfloat16), ff1w_ref[l],
                     preferred_element_type=jnp.float32) + ff1b
        ff = jnp.maximum(ff, 0.0)
        ff = jnp.dot(ff.astype(jnp.bfloat16), ff2w_ref[l],
                     preferred_element_type=jnp.float32) + ff2b
        h = _layer_norm(h + ff, ln2g, ln2b)

    # final layer norm, mean pool over sequence, MLP head
    hv = hvec_ref[...]                                      # (8, W) f32
    h = _layer_norm(h, hv[0:1, 0:D], hv[1:2, 0:D])
    pooled = jnp.mean(h, axis=0, keepdims=True)             # (1, D)
    # TODO(synk): nn.Dropout is stochastic only in training; eval-mode identity here.
    z = jnp.dot(pooled.astype(jnp.bfloat16), fc1w_ref[...],
                preferred_element_type=jnp.float32) + hv[2:3, 0:fc1w_ref.shape[1]]
    z = jnp.maximum(z, 0.0)
    out = jnp.dot(z.astype(jnp.bfloat16), fc2w_ref[...],
                  preferred_element_type=jnp.float32) + hv[3:4, 0:fc2w_ref.shape[1]]
    out_ref[...] = out[None].astype(out_ref.dtype)          # (1, 1, out)


# --------------------------- host-side param packing --------------------------

def pack_params(P, seq_len, *, nhead, num_layers):
    """One-time host transform: fold scale/bias, split heads, pack small vecs."""
    Din, D = P['win'].shape
    L, H = num_layers, nhead
    Dh = D // H
    F = P['ff1w'].shape[-1]
    out_size = P['fc2w'].shape[1]
    scale = 1.0 / np.sqrt(Dh)

    # q/k/v weights -> (L, 3H, Dh, D), head-major, stored so the kernel
    # contracts the *last* dim; fold 1/sqrt(Dh) into the Q block (and Q bias).
    qkvw = P['qkvw'].reshape(L, D, 3, H, Dh)
    qkvw = jnp.transpose(qkvw, (0, 2, 3, 4, 1)).reshape(L, 3 * H, Dh, D)
    qscale = jnp.concatenate([jnp.full((H,), scale, jnp.float32),
                              jnp.ones((2 * H,), jnp.float32)])
    qkvw = qkvw * qscale[None, :, None, None]

    qkvb = P['qkvb'].reshape(L, 3, H, Dh).reshape(L, 3 * H, 1, Dh)
    qkvb = qkvb * qscale[None, :, None, None]

    owh = P['ow'].reshape(L, H, Dh, D)                       # (L, H, Dh, D)

    # all per-layer bias / LayerNorm vectors packed sublane-wise: (L, 8, 4D)
    lvec = jnp.zeros((L, 8, F), jnp.float32)
    lvec = lvec.at[:, 0, :].set(P['ff1b'][:, 0, :])
    lvec = lvec.at[:, 1, :D].set(P['ob'][:, 0, :])
    lvec = lvec.at[:, 2, :D].set(P['ln1g'][:, 0, :])
    lvec = lvec.at[:, 3, :D].set(P['ln1b'][:, 0, :])
    lvec = lvec.at[:, 4, :D].set(P['ln2g'][:, 0, :])
    lvec = lvec.at[:, 5, :D].set(P['ln2b'][:, 0, :])
    lvec = lvec.at[:, 6, :D].set(P['ff2b'][:, 0, :])

    # head params packed sublane-wise: rows [lnfg, lnfb, fc1b, fc2b]
    W = max(D, D // 2, out_size)
    hvec = jnp.zeros((8, W), jnp.float32)
    hvec = hvec.at[0, :D].set(P['lnfg'][0])
    hvec = hvec.at[1, :D].set(P['lnfb'][0])
    hvec = hvec.at[2, :D // 2].set(P['fc1b'][0])
    hvec = hvec.at[3, :out_size].set(P['fc2b'][0])

    bf16 = jnp.bfloat16
    return dict(
        pos_bin=(P['pos'][:seq_len] + P['bin']).astype(jnp.float32),  # (S, D)
        win=P['win'].astype(bf16),
        qkvw=qkvw.astype(bf16),
        qkvb=qkvb.astype(jnp.float32),
        owh=owh.astype(bf16),
        ff1w=P['ff1w'].astype(bf16),
        ff2w=P['ff2w'].astype(bf16),
        lvec=lvec,
        hvec=hvec,
        fc1w=P['fc1w'].astype(bf16),
        fc2w=P['fc2w'].astype(bf16),
    )


# --------------------------------- wrapper -----------------------------------

def coordination_transformer(x, packed, *, nhead, num_layers):
    B, S, Din = x.shape
    D = packed['win'].shape[1]
    H, L = nhead, num_layers
    Dh = D // H
    F = packed['ff1w'].shape[-1]
    out_size = packed['fc2w'].shape[1]
    W = packed['hvec'].shape[1]

    kernel = partial(coordination_transformer_kernel,
                     num_layers=L, nhead=H)

    out = pl.pallas_call(
        kernel,
        out_shape=jax.ShapeDtypeStruct((B, 1, out_size), jnp.float32),
        grid=(B,),                                         # batch across TCs on v7x
        in_specs=[
            pl.BlockSpec((1, S, Din),        lambda b: (b, 0, 0)),
            pl.BlockSpec((S, D),             lambda b: (0, 0)),
            pl.BlockSpec((Din, D),           lambda b: (0, 0)),
            pl.BlockSpec((L, 3 * H, Dh, D),  lambda b: (0, 0, 0, 0)),
            pl.BlockSpec((L, 3 * H, 1, Dh),  lambda b: (0, 0, 0, 0)),
            pl.BlockSpec((L, H, Dh, D),      lambda b: (0, 0, 0, 0)),
            pl.BlockSpec((L, D, F),          lambda b: (0, 0, 0)),
            pl.BlockSpec((L, F, D),          lambda b: (0, 0, 0)),
            pl.BlockSpec((L, 8, F),          lambda b: (0, 0, 0)),
            pl.BlockSpec((8, W),             lambda b: (0, 0)),
            pl.BlockSpec((D, D // 2),        lambda b: (0, 0)),
            pl.BlockSpec((D // 2, out_size), lambda b: (0, 0)),
        ],
        out_specs=pl.BlockSpec((1, 1, out_size), lambda b: (b, 0, 0)),
        compiler_params=pltpu.CompilerParams(
            dimension_semantics=("parallel",)),
    )(x, packed['pos_bin'], packed['win'], packed['qkvw'], packed['qkvb'],
      packed['owh'], packed['ff1w'], packed['ff2w'], packed['lvec'],
      packed['hvec'], packed['fc1w'], packed['fc2w'])
    return out[:, 0, :]


# ---------------------------- parameter creation ------------------------------

def init_params(key, input_size, d_model, nhead, num_layers, output_size,
                max_len=1000):
    D, F = d_model, 4 * d_model
    ks = iter(jax.random.split(key, 32))

    def nrm(shape, scale):
        return scale * jax.random.normal(next(ks), shape, jnp.float32)

    P = {}
    P['win']  = nrm((input_size, D), 1.0 / np.sqrt(input_size))   # pre-transposed
    P['bin']  = nrm((1, D), 0.02)
    P['pos']  = nrm((max_len, D), 0.1)

    P['qkvw'] = nrm((num_layers, D, 3 * D), 1.0 / np.sqrt(D))
    P['qkvb'] = nrm((num_layers, 1, 3 * D), 0.02)
    P['ow']   = nrm((num_layers, D, D), 1.0 / np.sqrt(D))
    P['ob']   = nrm((num_layers, 1, D), 0.02)
    P['ln1g'] = 1.0 + nrm((num_layers, 1, D), 0.05)
    P['ln1b'] = nrm((num_layers, 1, D), 0.05)
    P['ln2g'] = 1.0 + nrm((num_layers, 1, D), 0.05)
    P['ln2b'] = nrm((num_layers, 1, D), 0.05)
    P['ff1w'] = nrm((num_layers, D, F), 1.0 / np.sqrt(D))
    P['ff1b'] = nrm((num_layers, 1, F), 0.02)
    P['ff2w'] = nrm((num_layers, F, D), 1.0 / np.sqrt(F))
    P['ff2b'] = nrm((num_layers, 1, D), 0.02)

    P['lnfg'] = 1.0 + nrm((1, D), 0.05)
    P['lnfb'] = nrm((1, D), 0.05)
    P['fc1w'] = nrm((D, D // 2), 1.0 / np.sqrt(D))
    P['fc1b'] = nrm((1, D // 2), 0.02)
    P['fc2w'] = nrm((D // 2, output_size), 1.0 / np.sqrt(D // 2))
    P['fc2b'] = nrm((1, output_size), 0.02)
    return P


# --------------------------- pure-JAX reference -------------------------------

def reference_forward(x, P, *, nhead, num_layers):
    prec = jax.lax.Precision.HIGHEST
    B, S, _ = x.shape

    def ln(v, g, b, eps=1e-5):
        mu = v.mean(-1, keepdims=True)
        vc = v - mu
        var = (vc * vc).mean(-1, keepdims=True)
        return vc / jnp.sqrt(var + eps) * g + b

    h = jnp.einsum('bsi,io->bso', x, P['win'], precision=prec) + P['bin']
    h = h + P['pos'][:S]
    D = h.shape[-1]
    Dh = D // nhead
    scale = 1.0 / np.sqrt(Dh)

    for l in range(num_layers):
        qkv = jnp.einsum('bsd,de->bse', h, P['qkvw'][l], precision=prec) + P['qkvb'][l]
        q, k, v = qkv[..., :D], qkv[..., D:2 * D], qkv[..., 2 * D:]
        qh = q.reshape(B, S, nhead, Dh)
        kh = k.reshape(B, S, nhead, Dh)
        vh = v.reshape(B, S, nhead, Dh)
        s = jnp.einsum('bqhd,bkhd->bhqk', qh, kh, precision=prec) * scale
        p = jax.nn.softmax(s, axis=-1)
        ctx = jnp.einsum('bhqk,bkhd->bqhd', p, vh, precision=prec).reshape(B, S, D)
        attn = jnp.einsum('bsd,de->bse', ctx, P['ow'][l], precision=prec) + P['ob'][l]
        h = ln(h + attn, P['ln1g'][l], P['ln1b'][l])
        ff = jax.nn.relu(jnp.einsum('bsd,df->bsf', h, P['ff1w'][l], precision=prec)
                         + P['ff1b'][l])
        ff = jnp.einsum('bsf,fd->bsd', ff, P['ff2w'][l], precision=prec) + P['ff2b'][l]
        h = ln(h + ff, P['ln2g'][l], P['ln2b'][l])

    h = ln(h, P['lnfg'], P['lnfb'])
    pooled = h.mean(axis=1)
    z = jax.nn.relu(jnp.dot(pooled, P['fc1w'], precision=prec) + P['fc1b'])
    return jnp.dot(z, P['fc2w'], precision=prec) + P['fc2b']


# ----------------------------------- main -------------------------------------

if __name__ == "__main__":
    B, S = 2, 8
    INPUT_SIZE, D_MODEL, NHEAD, NUM_LAYERS, OUTPUT_SIZE = 16, 32, 4, 2, 4

    key = jax.random.PRNGKey(0)
    k_params, k_x = jax.random.split(key)

    P = init_params(k_params, INPUT_SIZE, D_MODEL, NHEAD, NUM_LAYERS, OUTPUT_SIZE)
    x = jax.random.normal(k_x, (B, S, INPUT_SIZE), jnp.float32)

    packed = pack_params(P, S, nhead=NHEAD, num_layers=NUM_LAYERS)
    out = coordination_transformer(x, packed, nhead=NHEAD, num_layers=NUM_LAYERS)
    out = jax.block_until_ready(out)

    ref = jax.block_until_ready(
        reference_forward(x, P, nhead=NHEAD, num_layers=NUM_LAYERS))

    assert out.shape == (B, OUTPUT_SIZE), out.shape
    assert np.all(np.isfinite(np.asarray(out)))
    # tolerance accounts for bf16 MXU inputs (f32 accumulation) and the
    # approximate EUP reciprocal in the softmax vs. the f32-HIGHEST reference.
    np.testing.assert_allclose(np.asarray(out), np.asarray(ref),
                               rtol=3e-2, atol=3e-2)
    print("KERNEL_OK")
</pallas_src>

<mosaic_0001>
module attributes {stable_mosaic.version = 11 : i64} {
  func.func @coordination_transformer_kernel(%arg0: i32, %arg1: memref<1x8x16xf32, #tpu.memory_space<vmem>>, %arg2: memref<8x32xf32, #tpu.memory_space<vmem>>, %arg3: memref<16x32xbf16, #tpu.memory_space<vmem>>, %arg4: memref<2x12x8x32xbf16, #tpu.memory_space<vmem>>, %arg5: memref<2x12x1x8xf32, #tpu.memory_space<vmem>>, %arg6: memref<2x4x8x32xbf16, #tpu.memory_space<vmem>>, %arg7: memref<2x32x128xbf16, #tpu.memory_space<vmem>>, %arg8: memref<2x128x32xbf16, #tpu.memory_space<vmem>>, %arg9: memref<2x8x128xf32, #tpu.memory_space<vmem>>, %arg10: memref<8x32xf32, #tpu.memory_space<vmem>>, %arg11: memref<32x16xbf16, #tpu.memory_space<vmem>>, %arg12: memref<16x4xbf16, #tpu.memory_space<vmem>>, %arg13: memref<1x1x4xf32, #tpu.memory_space<vmem>>) attributes {dimension_semantics = [#tpu.dimension_semantics<parallel>], iteration_bounds = array<i64: 2>, scalar_prefetch = 0 : i64, scratch_operands = 0 : i64, tpu.core_type = #tpu.core_type<tc>, window_params = [{transform_indices = @transform_0, window_bounds = array<i64: 1, 8, 16>}, {pipeline_mode = #tpu.pipeline_mode<synchronous>, transform_indices = @transform_1, window_bounds = array<i64: 8, 32>}, {pipeline_mode = #tpu.pipeline_mode<synchronous>, transform_indices = @transform_2, window_bounds = array<i64: 16, 32>}, {pipeline_mode = #tpu.pipeline_mode<synchronous>, transform_indices = @transform_3, window_bounds = array<i64: 2, 12, 8, 32>}, {pipeline_mode = #tpu.pipeline_mode<synchronous>, transform_indices = @transform_4, window_bounds = array<i64: 2, 12, 1, 8>}, {pipeline_mode = #tpu.pipeline_mode<synchronous>, transform_indices = @transform_5, window_bounds = array<i64: 2, 4, 8, 32>}, {pipeline_mode = #tpu.pipeline_mode<synchronous>, transform_indices = @transform_6, window_bounds = array<i64: 2, 32, 128>}, {pipeline_mode = #tpu.pipeline_mode<synchronous>, transform_indices = @transform_7, window_bounds = array<i64: 2, 128, 32>}, {pipeline_mode = #tpu.pipeline_mode<synchronous>, transform_indices = @transform_8, window_bounds = array<i64: 2, 8, 128>}, {pipeline_mode = #tpu.pipeline_mode<synchronous>, transform_indices = @transform_9, window_bounds = array<i64: 8, 32>}, {pipeline_mode = #tpu.pipeline_mode<synchronous>, transform_indices = @transform_10, window_bounds = array<i64: 32, 16>}, {pipeline_mode = #tpu.pipeline_mode<synchronous>, transform_indices = @transform_11, window_bounds = array<i64: 16, 4>}, {transform_indices = @transform_12, window_bounds = array<i64: 1, 1, 4>}]} {
    %c0 = arith.constant 0 : index
    %c0_0 = arith.constant 0 : index
    %c0_1 = arith.constant 0 : index
    %0 = vector.load %arg1[%c0, %c0_0, %c0_1] : memref<1x8x16xf32, #tpu.memory_space<vmem>>, vector<1x8x16xf32>
    %1 = vector.shape_cast %0 : vector<1x8x16xf32> to vector<8x16xf32>
    %2 = arith.truncf %1 : vector<8x16xf32> to vector<8x16xbf16>
    %c0_2 = arith.constant 0 : index
    %c0_3 = arith.constant 0 : index
    %3 = vector.load %arg3[%c0_2, %c0_3] : memref<16x32xbf16, #tpu.memory_space<vmem>>, vector<16x32xbf16>
    %cst = arith.constant dense<0.000000e+00> : vector<8x32xf32>
    %4 = tpu.matmul %2, %3, %cst {dimension_numbers = #tpu.dot_dimension_numbers<[1], [0], [0], [1], [0, 0, 1, 1], [], []>} : vector<8x16xbf16>, vector<16x32xbf16>, vector<8x32xf32> -> vector<8x32xf32>
    %c0_4 = arith.constant 0 : index
    %c0_5 = arith.constant 0 : index
    %5 = vector.load %arg2[%c0_4, %c0_5] : memref<8x32xf32, #tpu.memory_space<vmem>>, vector<8x32xf32>
    %6 = arith.addf %4, %5 : vector<8x32xf32>
    %c0_6 = arith.constant 0 : index
    %c0_7 = arith.constant 0 : index
    %c0_8 = arith.constant 0 : index
    %7 = vector.load %arg9[%c0_6, %c0_7, %c0_8] : memref<2x8x128xf32, #tpu.memory_space<vmem>>, vector<1x8x128xf32>
    %8 = vector.shape_cast %7 : vector<1x8x128xf32> to vector<8x128xf32>
    %9 = vector.extract_strided_slice %8 {offsets = [0, 0], sizes = [1, 128], strides = [1, 1]} : vector<8x128xf32> to vector<1x128xf32>
    %10 = vector.extract_strided_slice %8 {offsets = [1, 0], sizes = [1, 32], strides = [1, 1]} : vector<8x128xf32> to vector<1x32xf32>
    %11 = vector.extract_strided_slice %8 {offsets = [2, 0], sizes = [1, 32], strides = [1, 1]} : vector<8x128xf32> to vector<1x32xf32>
    %12 = vector.extract_strided_slice %8 {offsets = [3, 0], sizes = [1, 32], strides = [1, 1]} : vector<8x128xf32> to vector<1x32xf32>
    %13 = vector.extract_strided_slice %8 {offsets = [4, 0], sizes = [1, 32], strides = [1, 1]} : vector<8x128xf32> to vector<1x32xf32>
    %14 = vector.extract_strided_slice %8 {offsets = [5, 0], sizes = [1, 32], strides = [1, 1]} : vector<8x128xf32> to vector<1x32xf32>
    %15 = vector.extract_strided_slice %8 {offsets = [6, 0], sizes = [1, 32], strides = [1, 1]} : vector<8x128xf32> to vector<1x32xf32>
    %16 = arith.truncf %6 : vector<8x32xf32> to vector<8x32xbf16>
    %17 = vector.shape_cast %16 : vector<8x32xbf16> to vector<1x8x32xbf16>
    %18 = vector.shape_cast %17 : vector<1x8x32xbf16> to vector<1x8x32xbf16>
    %19 = vector.broadcast %18 : vector<1x8x32xbf16> to vector<12x8x32xbf16>
    %c0_9 = arith.constant 0 : index
    %c0_10 = arith.constant 0 : index
    %c0_11 = arith.constant 0 : index
    %c0_12 = arith.constant 0 : index
    %20 = vector.load %arg4[%c0_9, %c0_10, %c0_11, %c0_12] : memref<2x12x8x32xbf16, #tpu.memory_space<vmem>>, vector<1x12x8x32xbf16>
    %21 = vector.shape_cast %20 : vector<1x12x8x32xbf16> to vector<12x8x32xbf16>
    "tpu.trace_start"() <{level = 10 : i32, message = "hsd,hfd->hsf"}> : () -> ()
    %cst_13 = arith.constant dense<0.000000e+00> : vector<12x8x8xf32>
    %22 = tpu.matmul %19, %21, %cst_13 {dimension_numbers = #tpu.dot_dimension_numbers<[2], [2], [1], [1], [0, 0, 0, 1, 1, 1], [0], [0]>} : vector<12x8x32xbf16>, vector<12x8x32xbf16>, vector<12x8x8xf32> -> vector<12x8x8xf32>
    "tpu.trace_stop"() : () -> ()
    %c0_14 = arith.constant 0 : index
    %c0_15 = arith.constant 0 : index
    %c0_16 = arith.constant 0 : index
    %c0_17 = arith.constant 0 : index
    %23 = vector.load %arg5[%c0_14, %c0_15, %c0_16, %c0_17] : memref<2x12x1x8xf32, #tpu.memory_space<vmem>>, vector<1x12x1x8xf32>
    %24 = vector.shape_cast %23 : vector<1x12x1x8xf32> to vector<12x1x8xf32>
    %25 = vector.broadcast %24 : vector<12x1x8xf32> to vector<12x8x8xf32>
    %26 = arith.addf %22, %25 : vector<12x8x8xf32>
    %27 = vector.extract_strided_slice %26 {offsets = [0, 0, 0], sizes = [4, 8, 8], strides = [1, 1, 1]} : vector<12x8x8xf32> to vector<4x8x8xf32>
    %28 = arith.truncf %27 : vector<4x8x8xf32> to vector<4x8x8xbf16>
    %29 = vector.extract_strided_slice %26 {offsets = [4, 0, 0], sizes = [4, 8, 8], strides = [1, 1, 1]} : vector<12x8x8xf32> to vector<4x8x8xf32>
    %30 = arith.truncf %29 : vector<4x8x8xf32> to vector<4x8x8xbf16>
    %31 = vector.extract_strided_slice %26 {offsets = [8, 0, 0], sizes = [4, 8, 8], strides = [1, 1, 1]} : vector<12x8x8xf32> to vector<4x8x8xf32>
    %32 = arith.truncf %31 : vector<4x8x8xf32> to vector<4x8x8xbf16>
    "tpu.trace_start"() <{level = 10 : i32, message = "hqd,hkd->hqk"}> : () -> ()
    %cst_18 = arith.constant dense<0.000000e+00> : vector<4x8x8xf32>
    %33 = tpu.matmul %28, %30, %cst_18 {dimension_numbers = #tpu.dot_dimension_numbers<[2], [2], [1], [1], [0, 0, 0, 1, 1, 1], [0], [0]>} : vector<4x8x8xbf16>, vector<4x8x8xbf16>, vector<4x8x8xf32> -> vector<4x8x8xf32>
    "tpu.trace_stop"() : () -> ()
    %cst_19 = arith.constant dense<0xFF800000> : vector<4x8xf32>
    %34 = vector.multi_reduction <maximumf>, %33, %cst_19 [2] : vector<4x8x8xf32> to vector<4x8xf32>
    %35 = vector.shape_cast %34 : vector<4x8xf32> to vector<4x8x1xf32>
    %36 = vector.broadcast %35 : vector<4x8x1xf32> to vector<4x8x8xf32>
    %37 = arith.subf %33, %36 : vector<4x8x8xf32>
    %38 = math.exp %37 : vector<4x8x8xf32>
    %cst_20 = arith.constant dense<0.000000e+00> : vector<4x8xf32>
    %39 = vector.multi_reduction <add>, %38, %cst_20 [2] : vector<4x8x8xf32> to vector<4x8xf32>
    %40 = vector.shape_cast %39 : vector<4x8xf32> to vector<4x8x1xf32>
    %41 = tpu.reciprocal %40 {approx = true} : vector<4x8x1xf32> -> vector<4x8x1xf32>
    %42 = vector.broadcast %41 : vector<4x8x1xf32> to vector<4x8x8xf32>
    %43 = arith.mulf %38, %42 : vector<4x8x8xf32>
    %44 = arith.truncf %43 : vector<4x8x8xf32> to vector<4x8x8xbf16>
    "tpu.trace_start"() <{level = 10 : i32, message = "hqk,hkd->hqd"}> : () -> ()
    %cst_21 = arith.constant dense<0.000000e+00> : vector<4x8x8xf32>
    %45 = tpu.matmul %44, %32, %cst_21 {dimension_numbers = #tpu.dot_dimension_numbers<[2], [1], [1], [2], [0, 0, 0, 1, 1, 2], [0], [0]>} : vector<4x8x8xbf16>, vector<4x8x8xbf16>, vector<4x8x8xf32> -> vector<4x8x8xf32>
    "tpu.trace_stop"() : () -> ()
    %46 = arith.truncf %45 : vector<4x8x8xf32> to vector<4x8x8xbf16>
    %c0_22 = arith.constant 0 : index
    %c0_23 = arith.constant 0 : index
    %c0_24 = arith.constant 0 : index
    %c0_25 = arith.constant 0 : index
    %47 = vector.load %arg6[%c0_22, %c0_23, %c0_24, %c0_25] : memref<2x4x8x32xbf16, #tpu.memory_space<vmem>>, vector<1x4x8x32xbf16>
    %48 = vector.shape_cast %47 : vector<1x4x8x32xbf16> to vector<4x8x32xbf16>
    "tpu.trace_start"() <{level = 10 : i32, message = "hqd,hdf->hqf"}> : () -> ()
    %cst_26 = arith.constant dense<0.000000e+00> : vector<4x8x32xf32>
    %49 = tpu.matmul %46, %48, %cst_26 {dimension_numbers = #tpu.dot_dimension_numbers<[2], [1], [1], [2], [0, 0, 0, 1, 1, 2], [0], [0]>} : vector<4x8x8xbf16>, vector<4x8x32xbf16>, vector<4x8x32xf32> -> vector<4x8x32xf32>
    "tpu.trace_stop"() : () -> ()
    %cst_27 = arith.constant dense<0.000000e+00> : vector<8x32xf32>
    %50 = vector.multi_reduction <add>, %49, %cst_27 [0] : vector<4x8x32xf32> to vector<8x32xf32>
    %51 = vector.broadcast %10 : vector<1x32xf32> to vector<8x32xf32>
    %52 = arith.addf %50, %51 : vector<8x32xf32>
    %53 = arith.addf %6, %52 : vector<8x32xf32>
    %cst_28 = arith.constant dense<0.000000e+00> : vector<8xf32>
    %54 = vector.multi_reduction <add>, %53, %cst_28 [1] : vector<8x32xf32> to vector<8xf32>
    %55 = vector.shape_cast %54 : vector<8xf32> to vector<8x1xf32>
    %cst_29 = arith.constant 3.200000e+01 : f32
    %56 = vector.broadcast %cst_29 : f32 to vector<8x1xf32>
    %57 = arith.divf %55, %56 : vector<8x1xf32>
    %58 = vector.broadcast %57 : vector<8x1xf32> to vector<8x32xf32>
    %59 = arith.subf %53, %58 : vector<8x32xf32>
    %60 = arith.mulf %59, %59 : vector<8x32xf32>
    %cst_30 = arith.constant dense<0.000000e+00> : vector<8xf32>
    %61 = vector.multi_reduction <add>, %60, %cst_30 [1] : vector<8x32xf32> to vector<8xf32>
    %62 = vector.shape_cast %61 : vector<8xf32> to vector<8x1xf32>
    %cst_31 = arith.constant 3.200000e+01 : f32
    %63 = vector.broadcast %cst_31 : f32 to vector<8x1xf32>
    %64 = arith.divf %62, %63 : vector<8x1xf32>
    %cst_32 = arith.constant 9.99999974E-6 : f32
    %65 = vector.broadcast %cst_32 : f32 to vector<8x1xf32>
    %66 = arith.addf %64, %65 : vector<8x1xf32>
    %67 = math.rsqrt %66 : vector<8x1xf32>
    %68 = vector.broadcast %67 : vector<8x1xf32> to vector<8x32xf32>
    %69 = arith.mulf %59, %68 : vector<8x32xf32>
    %70 = vector.broadcast %11 : vector<1x32xf32> to vector<8x32xf32>
    %71 = arith.mulf %69, %70 : vector<8x32xf32>
    %72 = vector.broadcast %12 : vector<1x32xf32> to vector<8x32xf32>
    %73 = arith.addf %71, %72 : vector<8x32xf32>
    %74 = arith.truncf %73 : vector<8x32xf32> to vector<8x32xbf16>
    %c0_33 = arith.constant 0 : index
    %c0_34 = arith.constant 0 : index
    %c0_35 = arith.constant 0 : index
    %75 = vector.load %arg7[%c0_33, %c0_34, %c0_35] : memref<2x32x128xbf16, #tpu.memory_space<vmem>>, vector<1x32x128xbf16>
    %76 = vector.shape_cast %75 : vector<1x32x128xbf16> to vector<32x128xbf16>
    %cst_36 = arith.constant dense<0.000000e+00> : vector<8x128xf32>
    %77 = tpu.matmul %74, %76, %cst_36 {dimension_numbers = #tpu.dot_dimension_numbers<[1], [0], [0], [1], [0, 0, 1, 1], [], []>} : vector<8x32xbf16>, vector<32x128xbf16>, vector<8x128xf32> -> vector<8x128xf32>
    %78 = vector.broadcast %9 : vector<1x128xf32> to vector<8x128xf32>
    %79 = arith.addf %77, %78 : vector<8x128xf32>
    %cst_37 = arith.constant 0.000000e+00 : f32
    %80 = vector.broadcast %cst_37 : f32 to vector<8x128xf32>
    %81 = arith.maximumf %79, %80 : vector<8x128xf32>
    %82 = arith.truncf %81 : vector<8x128xf32> to vector<8x128xbf16>
    %c0_38 = arith.constant 0 : index
    %c0_39 = arith.constant 0 : index
    %c0_40 = arith.constant 0 : index
    %83 = vector.load %arg8[%c0_38, %c0_39, %c0_40] : memref<2x128x32xbf16, #tpu.memory_space<vmem>>, vector<1x128x32xbf16>
    %84 = vector.shape_cast %83 : vector<1x128x32xbf16> to vector<128x32xbf16>
    %cst_41 = arith.constant dense<0.000000e+00> : vector<8x32xf32>
    %85 = tpu.matmul %82, %84, %cst_41 {dimension_numbers = #tpu.dot_dimension_numbers<[1], [0], [0], [1], [0, 0, 1, 1], [], []>} : vector<8x128xbf16>, vector<128x32xbf16>, vector<8x32xf32> -> vector<8x32xf32>
    %86 = vector.broadcast %15 : vector<1x32xf32> to vector<8x32xf32>
    %87 = arith.addf %85, %86 : vector<8x32xf32>
    %88 = arith.addf %73, %87 : vector<8x32xf32>
    %cst_42 = arith.constant dense<0.000000e+00> : vector<8xf32>
    %89 = vector.multi_reduction <add>, %88, %cst_42 [1] : vector<8x32xf32> to vector<8xf32>
    %90 = vector.shape_cast %89 : vector<8xf32> to vector<8x1xf32>
    %cst_43 = arith.constant 3.200000e+01 : f32
    %91 = vector.broadcast %cst_43 : f32 to vector<8x1xf32>
    %92 = arith.divf %90, %91 : vector<8x1xf32>
    %93 = vector.broadcast %92 : vector<8x1xf32> to vector<8x32xf32>
    %94 = arith.subf %88, %93 : vector<8x32xf32>
    %95 = arith.mulf %94, %94 : vector<8x32xf32>
    %cst_44 = arith.constant dense<0.000000e+00> : vector<8xf32>
    %96 = vector.multi_reduction <add>, %95, %cst_44 [1] : vector<8x32xf32> to vector<8xf32>
    %97 = vector.shape_cast %96 : vector<8xf32> to vector<8x1xf32>
    %cst_45 = arith.constant 3.200000e+01 : f32
    %98 = vector.broadcast %cst_45 : f32 to vector<8x1xf32>
    %99 = arith.divf %97, %98 : vector<8x1xf32>
    %cst_46 = arith.constant 9.99999974E-6 : f32
    %100 = vector.broadcast %cst_46 : f32 to vector<8x1xf32>
    %101 = arith.addf %99, %100 : vector<8x1xf32>
    %102 = math.rsqrt %101 : vector<8x1xf32>
    %103 = vector.broadcast %102 : vector<8x1xf32> to vector<8x32xf32>
    %104 = arith.mulf %94, %103 : vector<8x32xf32>
    %105 = vector.broadcast %13 : vector<1x32xf32> to vector<8x32xf32>
    %106 = arith.mulf %104, %105 : vector<8x32xf32>
    %107 = vector.broadcast %14 : vector<1x32xf32> to vector<8x32xf32>
    %108 = arith.addf %106, %107 : vector<8x32xf32>
    %c1 = arith.constant 1 : index
    %c0_47 = arith.constant 0 : index
    %c0_48 = arith.constant 0 : index
    %109 = vector.load %arg9[%c1, %c0_47, %c0_48] : memref<2x8x128xf32, #tpu.memory_space<vmem>>, vector<1x8x128xf32>
    %110 = vector.shape_cast %109 : vector<1x8x128xf32> to vector<8x128xf32>
    %111 = vector.extract_strided_slice %110 {offsets = [0, 0], sizes = [1, 128], strides = [1, 1]} : vector<8x128xf32> to vector<1x128xf32>
    %112 = vector.extract_strided_slice %110 {offsets = [1, 0], sizes = [1, 32], strides = [1, 1]} : vector<8x128xf32> to vector<1x32xf32>
    %113 = vector.extract_strided_slice %110 {offsets = [2, 0], sizes = [1, 32], strides = [1, 1]} : vector<8x128xf32> to vector<1x32xf32>
    %114 = vector.extract_strided_slice %110 {offsets = [3, 0], sizes = [1, 32], strides = [1, 1]} : vector<8x128xf32> to vector<1x32xf32>
    %115 = vector.extract_strided_slice %110 {offsets = [4, 0], sizes = [1, 32], strides = [1, 1]} : vector<8x128xf32> to vector<1x32xf32>
    %116 = vector.extract_strided_slice %110 {offsets = [5, 0], sizes = [1, 32], strides = [1, 1]} : vector<8x128xf32> to vector<1x32xf32>
    %117 = vector.extract_strided_slice %110 {offsets = [6, 0], sizes = [1, 32], strides = [1, 1]} : vector<8x128xf32> to vector<1x32xf32>
    %118 = arith.truncf %108 : vector<8x32xf32> to vector<8x32xbf16>
    %119 = vector.shape_cast %118 : vector<8x32xbf16> to vector<1x8x32xbf16>
    %120 = vector.shape_cast %119 : vector<1x8x32xbf16> to vector<1x8x32xbf16>
    %121 = vector.broadcast %120 : vector<1x8x32xbf16> to vector<12x8x32xbf16>
    %c1_49 = arith.constant 1 : index
    %c0_50 = arith.constant 0 : index
    %c0_51 = arith.constant 0 : index
    %c0_52 = arith.constant 0 : index
    %122 = vector.load %arg4[%c1_49, %c0_50, %c0_51, %c0_52] : memref<2x12x8x32xbf16, #tpu.memory_space<vmem>>, vector<1x12x8x32xbf16>
    %123 = vector.shape_cast %122 : vector<1x12x8x32xbf16> to vector<12x8x32xbf16>
    "tpu.trace_start"() <{level = 10 : i32, message = "hsd,hfd->hsf"}> : () -> ()
    %cst_53 = arith.constant dense<0.000000e+00> : vector<12x8x8xf32>
    %124 = tpu.matmul %121, %123, %cst_53 {dimension_numbers = #tpu.dot_dimension_numbers<[2], [2], [1], [1], [0, 0, 0, 1, 1, 1], [0], [0]>} : vector<12x8x32xbf16>, vector<12x8x32xbf16>, vector<12x8x8xf32> -> vector<12x8x8xf32>
    "tpu.trace_stop"() : () -> ()
    %c1_54 = arith.constant 1 : index
    %c0_55 = arith.constant 0 : index
    %c0_56 = arith.constant 0 : index
    %c0_57 = arith.constant 0 : index
    %125 = vector.load %arg5[%c1_54, %c0_55, %c0_56, %c0_57] : memref<2x12x1x8xf32, #tpu.memory_space<vmem>>, vector<1x12x1x8xf32>
    %126 = vector.shape_cast %125 : vector<1x12x1x8xf32> to vector<12x1x8xf32>
    %127 = vector.broadcast %126 : vector<12x1x8xf32> to vector<12x8x8xf32>
    %128 = arith.addf %124, %127 : vector<12x8x8xf32>
    %129 = vector.extract_strided_slice %128 {offsets = [0, 0, 0], sizes = [4, 8, 8], strides = [1, 1, 1]} : vector<12x8x8xf32> to vector<4x8x8xf32>
    %130 = arith.truncf %129 : vector<4x8x8xf32> to vector<4x8x8xbf16>
    %131 = vector.extract_strided_slice %128 {offsets = [4, 0, 0], sizes = [4, 8, 8], strides = [1, 1, 1]} : vector<12x8x8xf32> to vector<4x8x8xf32>
    %132 = arith.truncf %131 : vector<4x8x8xf32> to vector<4x8x8xbf16>
    %133 = vector.extract_strided_slice %128 {offsets = [8, 0, 0], sizes = [4, 8, 8], strides = [1, 1, 1]} : vector<12x8x8xf32> to vector<4x8x8xf32>
    %134 = arith.truncf %133 : vector<4x8x8xf32> to vector<4x8x8xbf16>
    "tpu.trace_start"() <{level = 10 : i32, message = "hqd,hkd->hqk"}> : () -> ()
    %cst_58 = arith.constant dense<0.000000e+00> : vector<4x8x8xf32>
    %135 = tpu.matmul %130, %132, %cst_58 {dimension_numbers = #tpu.dot_dimension_numbers<[2], [2], [1], [1], [0, 0, 0, 1, 1, 1], [0], [0]>} : vector<4x8x8xbf16>, vector<4x8x8xbf16>, vector<4x8x8xf32> -> vector<4x8x8xf32>
    "tpu.trace_stop"() : () -> ()
    %cst_59 = arith.constant dense<0xFF800000> : vector<4x8xf32>
    %136 = vector.multi_reduction <maximumf>, %135, %cst_59 [2] : vector<4x8x8xf32> to vector<4x8xf32>
    %137 = vector.shape_cast %136 : vector<4x8xf32> to vector<4x8x1xf32>
    %138 = vector.broadcast %137 : vector<4x8x1xf32> to vector<4x8x8xf32>
    %139 = arith.subf %135, %138 : vector<4x8x8xf32>
    %140 = math.exp %139 : vector<4x8x8xf32>
    %cst_60 = arith.constant dense<0.000000e+00> : vector<4x8xf32>
    %141 = vector.multi_reduction <add>, %140, %cst_60 [2] : vector<4x8x8xf32> to vector<4x8xf32>
    %142 = vector.shape_cast %141 : vector<4x8xf32> to vector<4x8x1xf32>
    %143 = tpu.reciprocal %142 {approx = true} : vector<4x8x1xf32> -> vector<4x8x1xf32>
    %144 = vector.broadcast %143 : vector<4x8x1xf32> to vector<4x8x8xf32>
    %145 = arith.mulf %140, %144 : vector<4x8x8xf32>
    %146 = arith.truncf %145 : vector<4x8x8xf32> to vector<4x8x8xbf16>
    "tpu.trace_start"() <{level = 10 : i32, message = "hqk,hkd->hqd"}> : () -> ()
    %cst_61 = arith.constant dense<0.000000e+00> : vector<4x8x8xf32>
    %147 = tpu.matmul %146, %134, %cst_61 {dimension_numbers = #tpu.dot_dimension_numbers<[2], [1], [1], [2], [0, 0, 0, 1, 1, 2], [0], [0]>} : vector<4x8x8xbf16>, vector<4x8x8xbf16>, vector<4x8x8xf32> -> vector<4x8x8xf32>
    "tpu.trace_stop"() : () -> ()
    %148 = arith.truncf %147 : vector<4x8x8xf32> to vector<4x8x8xbf16>
    %c1_62 = arith.constant 1 : index
    %c0_63 = arith.constant 0 : index
    %c0_64 = arith.constant 0 : index
    %c0_65 = arith.constant 0 : index
    %149 = vector.load %arg6[%c1_62, %c0_63, %c0_64, %c0_65] : memref<2x4x8x32xbf16, #tpu.memory_space<vmem>>, vector<1x4x8x32xbf16>
    %150 = vector.shape_cast %149 : vector<1x4x8x32xbf16> to vector<4x8x32xbf16>
    "tpu.trace_start"() <{level = 10 : i32, message = "hqd,hdf->hqf"}> : () -> ()
    %cst_66 = arith.constant dense<0.000000e+00> : vector<4x8x32xf32>
    %151 = tpu.matmul %148, %150, %cst_66 {dimension_numbers = #tpu.dot_dimension_numbers<[2], [1], [1], [2], [0, 0, 0, 1, 1, 2], [0], [0]>} : vector<4x8x8xbf16>, vector<4x8x32xbf16>, vector<4x8x32xf32> -> vector<4x8x32xf32>
    "tpu.trace_stop"() : () -> ()
    %cst_67 = arith.constant dense<0.000000e+00> : vector<8x32xf32>
    %152 = vector.multi_reduction <add>, %151, %cst_67 [0] : vector<4x8x32xf32> to vector<8x32xf32>
    %153 = vector.broadcast %112 : vector<1x32xf32> to vector<8x32xf32>
    %154 = arith.addf %152, %153 : vector<8x32xf32>
    %155 = arith.addf %108, %154 : vector<8x32xf32>
    %cst_68 = arith.constant dense<0.000000e+00> : vector<8xf32>
    %156 = vector.multi_reduction <add>, %155, %cst_68 [1] : vector<8x32xf32> to vector<8xf32>
    %157 = vector.shape_cast %156 : vector<8xf32> to vector<8x1xf32>
    %cst_69 = arith.constant 3.200000e+01 : f32
    %158 = vector.broadcast %cst_69 : f32 to vector<8x1xf32>
    %159 = arith.divf %157, %158 : vector<8x1xf32>
    %160 = vector.broadcast %159 : vector<8x1xf32> to vector<8x32xf32>
    %161 = arith.subf %155, %160 : vector<8x32xf32>
    %162 = arith.mulf %161, %161 : vector<8x32xf32>
    %cst_70 = arith.constant dense<0.000000e+00> : vector<8xf32>
    %163 = vector.multi_reduction <add>, %162, %cst_70 [1] : vector<8x32xf32> to vector<8xf32>
    %164 = vector.shape_cast %163 : vector<8xf32> to vector<8x1xf32>
    %cst_71 = arith.constant 3.200000e+01 : f32
    %165 = vector.broadcast %cst_71 : f32 to vector<8x1xf32>
    %166 = arith.divf %164, %165 : vector<8x1xf32>
    %cst_72 = arith.constant 9.99999974E-6 : f32
    %167 = vector.broadcast %cst_72 : f32 to vector<8x1xf32>
    %168 = arith.addf %166, %167 : vector<8x1xf32>
    %169 = math.rsqrt %168 : vector<8x1xf32>
    %170 = vector.broadcast %169 : vector<8x1xf32> to vector<8x32xf32>
    %171 = arith.mulf %161, %170 : vector<8x32xf32>
    %172 = vector.broadcast %113 : vector<1x32xf32> to vector<8x32xf32>
    %173 = arith.mulf %171, %172 : vector<8x32xf32>
    %174 = vector.broadcast %114 : vector<1x32xf32> to vector<8x32xf32>
    %175 = arith.addf %173, %174 : vector<8x32xf32>
    %176 = arith.truncf %175 : vector<8x32xf32> to vector<8x32xbf16>
    %c1_73 = arith.constant 1 : index
    %c0_74 = arith.constant 0 : index
    %c0_75 = arith.constant 0 : index
    %177 = vector.load %arg7[%c1_73, %c0_74, %c0_75] : memref<2x32x128xbf16, #tpu.memory_space<vmem>>, vector<1x32x128xbf16>
    %178 = vector.shape_cast %177 : vector<1x32x128xbf16> to vector<32x128xbf16>
    %cst_76 = arith.constant dense<0.000000e+00> : vector<8x128xf32>
    %179 = tpu.matmul %176, %178, %cst_76 {dimension_numbers = #tpu.dot_dimension_numbers<[1], [0], [0], [1], [0, 0, 1, 1], [], []>} : vector<8x32xbf16>, vector<32x128xbf16>, vector<8x128xf32> -> vector<8x128xf32>
    %180 = vector.broadcast %111 : vector<1x128xf32> to vector<8x128xf32>
    %181 = arith.addf %179, %180 : vector<8x128xf32>
    %cst_77 = arith.constant 0.000000e+00 : f32
    %182 = vector.broadcast %cst_77 : f32 to vector<8x128xf32>
    %183 = arith.maximumf %181, %182 : vector<8x128xf32>
    %184 = arith.truncf %183 : vector<8x128xf32> to vector<8x128xbf16>
    %c1_78 = arith.constant 1 : index
    %c0_79 = arith.constant 0 : index
    %c0_80 = arith.constant 0 : index
    %185 = vector.load %arg8[%c1_78, %c0_79, %c0_80] : memref<2x128x32xbf16, #tpu.memory_space<vmem>>, vector<1x128x32xbf16>
    %186 = vector.shape_cast %185 : vector<1x128x32xbf16> to vector<128x32xbf16>
    %cst_81 = arith.constant dense<0.000000e+00> : vector<8x32xf32>
    %187 = tpu.matmul %184, %186, %cst_81 {dimension_numbers = #tpu.dot_dimension_numbers<[1], [0], [0], [1], [0, 0, 1, 1], [], []>} : vector<8x128xbf16>, vector<128x32xbf16>, vector<8x32xf32> -> vector<8x32xf32>
    %188 = vector.broadcast %117 : vector<1x32xf32> to vector<8x32xf32>
    %189 = arith.addf %187, %188 : vector<8x32xf32>
    %190 = arith.addf %175, %189 : vector<8x32xf32>
    %cst_82 = arith.constant dense<0.000000e+00> : vector<8xf32>
    %191 = vector.multi_reduction <add>, %190, %cst_82 [1] : vector<8x32xf32> to vector<8xf32>
    %192 = vector.shape_cast %191 : vector<8xf32> to vector<8x1xf32>
    %cst_83 = arith.constant 3.200000e+01 : f32
    %193 = vector.broadcast %cst_83 : f32 to vector<8x1xf32>
    %194 = arith.divf %192, %193 : vector<8x1xf32>
    %195 = vector.broadcast %194 : vector<8x1xf32> to vector<8x32xf32>
    %196 = arith.subf %190, %195 : vector<8x32xf32>
    %197 = arith.mulf %196, %196 : vector<8x32xf32>
    %cst_84 = arith.constant dense<0.000000e+00> : vector<8xf32>
    %198 = vector.multi_reduction <add>, %197, %cst_84 [1] : vector<8x32xf32> to vector<8xf32>
    %199 = vector.shape_cast %198 : vector<8xf32> to vector<8x1xf32>
    %cst_85 = arith.constant 3.200000e+01 : f32
    %200 = vector.broadcast %cst_85 : f32 to vector<8x1xf32>
    %201 = arith.divf %199, %200 : vector<8x1xf32>
    %cst_86 = arith.constant 9.99999974E-6 : f32
    %202 = vector.broadcast %cst_86 : f32 to vector<8x1xf32>
    %203 = arith.addf %201, %202 : vector<8x1xf32>
    %204 = math.rsqrt %203 : vector<8x1xf32>
    %205 = vector.broadcast %204 : vector<8x1xf32> to vector<8x32xf32>
    %206 = arith.mulf %196, %205 : vector<8x32xf32>
    %207 = vector.broadcast %115 : vector<1x32xf32> to vector<8x32xf32>
    %208 = arith.mulf %206, %207 : vector<8x32xf32>
    %209 = vector.broadcast %116 : vector<1x32xf32> to vector<8x32xf32>
    %210 = arith.addf %208, %209 : vector<8x32xf32>
    %c0_87 = arith.constant 0 : index
    %c0_88 = arith.constant 0 : index
    %211 = vector.load %arg10[%c0_87, %c0_88] : memref<8x32xf32, #tpu.memory_space<vmem>>, vector<8x32xf32>
    %212 = vector.extract_strided_slice %211 {offsets = [0, 0], sizes = [1, 32], strides = [1, 1]} : vector<8x32xf32> to vector<1x32xf32>
    %213 = vector.extract_strided_slice %211 {offsets = [1, 0], sizes = [1, 32], strides = [1, 1]} : vector<8x32xf32> to vector<1x32xf32>
    %cst_89 = arith.constant dense<0.000000e+00> : vector<8xf32>
    %214 = vector.multi_reduction <add>, %210, %cst_89 [1] : vector<8x32xf32> to vector<8xf32>
    %215 = vector.shape_cast %214 : vector<8xf32> to vector<8x1xf32>
    %cst_90 = arith.constant 3.200000e+01 : f32
    %216 = vector.broadcast %cst_90 : f32 to vector<8x1xf32>
    %217 = arith.divf %215, %216 : vector<8x1xf32>
    %218 = vector.broadcast %217 : vector<8x1xf32> to vector<8x32xf32>
    %219 = arith.subf %210, %218 : vector<8x32xf32>
    %220 = arith.mulf %219, %219 : vector<8x32xf32>
    %cst_91 = arith.constant dense<0.000000e+00> : vector<8xf32>
    %221 = vector.multi_reduction <add>, %220, %cst_91 [1] : vector<8x32xf32> to vector<8xf32>
    %222 = vector.shape_cast %221 : vector<8xf32> to vector<8x1xf32>
    %cst_92 = arith.constant 3.200000e+01 : f32
    %223 = vector.broadcast %cst_92 : f32 to vector<8x1xf32>
    %224 = arith.divf %222, %223 : vector<8x1xf32>
    %cst_93 = arith.constant 9.99999974E-6 : f32
    %225 = vector.broadcast %cst_93 : f32 to vector<8x1xf32>
    %226 = arith.addf %224, %225 : vector<8x1xf32>
    %227 = math.rsqrt %226 : vector<8x1xf32>
    %228 = vector.broadcast %227 : vector<8x1xf32> to vector<8x32xf32>
    %229 = arith.mulf %219, %228 : vector<8x32xf32>
    %230 = vector.broadcast %212 : vector<1x32xf32> to vector<8x32xf32>
    %231 = arith.mulf %229, %230 : vector<8x32xf32>
    %232 = vector.broadcast %213 : vector<1x32xf32> to vector<8x32xf32>
    %233 = arith.addf %231, %232 : vector<8x32xf32>
    %cst_94 = arith.constant dense<0.000000e+00> : vector<32xf32>
    %234 = vector.multi_reduction <add>, %233, %cst_94 [0] : vector<8x32xf32> to vector<32xf32>
    %235 = vector.shape_cast %234 : vector<32xf32> to vector<1x32xf32>
    %cst_95 = arith.constant 8.000000e+00 : f32
    %236 = vector.broadcast %cst_95 : f32 to vector<1x32xf32>
    %237 = arith.divf %235, %236 : vector<1x32xf32>
    %238 = arith.truncf %237 : vector<1x32xf32> to vector<1x32xbf16>
    %c0_96 = arith.constant 0 : index
    %c0_97 = arith.constant 0 : index
    %239 = vector.load %arg11[%c0_96, %c0_97] : memref<32x16xbf16, #tpu.memory_space<vmem>>, vector<32x16xbf16>
    %cst_98 = arith.constant dense<0.000000e+00> : vector<1x16xf32>
    %240 = tpu.matmul %238, %239, %cst_98 {dimension_numbers = #tpu.dot_dimension_numbers<[1], [0], [0], [1], [0, 0, 1, 1], [], []>} : vector<1x32xbf16>, vector<32x16xbf16>, vector<1x16xf32> -> vector<1x16xf32>
    %241 = vector.extract_strided_slice %211 {offsets = [2, 0], sizes = [1, 16], strides = [1, 1]} : vector<8x32xf32> to vector<1x16xf32>
    %242 = arith.addf %240, %241 : vector<1x16xf32>
    %cst_99 = arith.constant 0.000000e+00 : f32
    %243 = vector.broadcast %cst_99 : f32 to vector<1x16xf32>
    %244 = arith.maximumf %242, %243 : vector<1x16xf32>
    %245 = arith.truncf %244 : vector<1x16xf32> to vector<1x16xbf16>
    %c0_100 = arith.constant 0 : index
    %c0_101 = arith.constant 0 : index
    %246 = vector.load %arg12[%c0_100, %c0_101] : memref<16x4xbf16, #tpu.memory_space<vmem>>, vector<16x4xbf16>
    %cst_102 = arith.constant dense<0.000000e+00> : vector<1x4xf32>
    %247 = tpu.matmul %245, %246, %cst_102 {dimension_numbers = #tpu.dot_dimension_numbers<[1], [0], [0], [1], [0, 0, 1, 1], [], []>} : vector<1x16xbf16>, vector<16x4xbf16>, vector<1x4xf32> -> vector<1x4xf32>
    %248 = vector.extract_strided_slice %211 {offsets = [3, 0], sizes = [1, 4], strides = [1, 1]} : vector<8x32xf32> to vector<1x4xf32>
    %249 = arith.addf %247, %248 : vector<1x4xf32>
    %250 = vector.shape_cast %249 : vector<1x4xf32> to vector<1x1x4xf32>
    %c0_103 = arith.constant 0 : index
    %c0_104 = arith.constant 0 : index
    %c0_105 = arith.constant 0 : index
    %251 = vector.load %arg13[%c0_103, %c0_104, %c0_105] : memref<1x1x4xf32, #tpu.memory_space<vmem>>, vector<1x1x4xf32>
    tpu.vector_store %arg13[%c0_103, %c0_104, %c0_105], %250 {strides = array<i32>} : memref<1x1x4xf32, #tpu.memory_space<vmem>>, vector<1x1x4xf32>,
    return
  }
  func.func @transform_0(%arg0: i32) -> (i32, i32, i32) {
    %c0_i32 = arith.constant 0 : i32
    %c0_i32_0 = arith.constant 0 : i32
    %c0_i32_1 = arith.constant 0 : i32
    return %arg0, %c0_i32, %c0_i32_0 : i32, i32, i32
  }
  func.func @transform_1(%arg0: i32) -> (i32, i32) {
    %c0_i32 = arith.constant 0 : i32
    %c0_i32_0 = arith.constant 0 : i32
    %c0_i32_1 = arith.constant 0 : i32
    return %c0_i32, %c0_i32_0 : i32, i32
  }
  func.func @transform_2(%arg0: i32) -> (i32, i32) {
    %c0_i32 = arith.constant 0 : i32
    %c0_i32_0 = arith.constant 0 : i32
    %c0_i32_1 = arith.constant 0 : i32
    return %c0_i32, %c0_i32_0 : i32, i32
  }
  func.func @transform_3(%arg0: i32) -> (i32, i32, i32, i32) {
    %c0_i32 = arith.constant 0 : i32
    %c0_i32_0 = arith.constant 0 : i32
    %c0_i32_1 = arith.constant 0 : i32
    %c0_i32_2 = arith.constant 0 : i32
    %c0_i32_3 = arith.constant 0 : i32
    return %c0_i32, %c0_i32_0, %c0_i32_1, %c0_i32_2 : i32, i32, i32, i32
  }
  func.func @transform_4(%arg0: i32) -> (i32, i32, i32, i32) {
    %c0_i32 = arith.constant 0 : i32
    %c0_i32_0 = arith.constant 0 : i32
    %c0_i32_1 = arith.constant 0 : i32
    %c0_i32_2 = arith.constant 0 : i32
    %c0_i32_3 = arith.constant 0 : i32
    return %c0_i32, %c0_i32_0, %c0_i32_1, %c0_i32_2 : i32, i32, i32, i32
  }
  func.func @transform_5(%arg0: i32) -> (i32, i32, i32, i32) {
    %c0_i32 = arith.constant 0 : i32
    %c0_i32_0 = arith.constant 0 : i32
    %c0_i32_1 = arith.constant 0 : i32
    %c0_i32_2 = arith.constant 0 : i32
    %c0_i32_3 = arith.constant 0 : i32
    return %c0_i32, %c0_i32_0, %c0_i32_1, %c0_i32_2 : i32, i32, i32, i32
  }
  func.func @transform_6(%arg0: i32) -> (i32, i32, i32) {
    %c0_i32 = arith.constant 0 : i32
    %c0_i32_0 = arith.constant 0 : i32
    %c0_i32_1 = arith.constant 0 : i32
    %c0_i32_2 = arith.constant 0 : i32
    return %c0_i32, %c0_i32_0, %c0_i32_1 : i32, i32, i32
  }
  func.func @transform_7(%arg0: i32) -> (i32, i32, i32) {
    %c0_i32 = arith.constant 0 : i32
    %c0_i32_0 = arith.constant 0 : i32
    %c0_i32_1 = arith.constant 0 : i32
    %c0_i32_2 = arith.constant 0 : i32
    return %c0_i32, %c0_i32_0, %c0_i32_1 : i32, i32, i32
  }
  func.func @transform_8(%arg0: i32) -> (i32, i32, i32) {
    %c0_i32 = arith.constant 0 : i32
    %c0_i32_0 = arith.constant 0 : i32
    %c0_i32_1 = arith.constant 0 : i32
    %c0_i32_2 = arith.constant 0 : i32
    return %c0_i32, %c0_i32_0, %c0_i32_1 : i32, i32, i32
  }
  func.func @transform_9(%arg0: i32) -> (i32, i32) {
    %c0_i32 = arith.constant 0 : i32
    %c0_i32_0 = arith.constant 0 : i32
    %c0_i32_1 = arith.constant 0 : i32
    return %c0_i32, %c0_i32_0 : i32, i32
  }
  func.func @transform_10(%arg0: i32) -> (i32, i32) {
    %c0_i32 = arith.constant 0 : i32
    %c0_i32_0 = arith.constant 0 : i32
    %c0_i32_1 = arith.constant 0 : i32
    return %c0_i32, %c0_i32_0 : i32, i32
  }
  func.func @transform_11(%arg0: i32) -> (i32, i32) {
    %c0_i32 = arith.constant 0 : i32
    %c0_i32_0 = arith.constant 0 : i32
    %c0_i32_1 = arith.constant 0 : i32
    return %c0_i32, %c0_i32_0 : i32, i32
  }
  func.func @transform_12(%arg0: i32) -> (i32, i32, i32) {
    %c0_i32 = arith.constant 0 : i32
    %c0_i32_0 = arith.constant 0 : i32
    %c0_i32_1 = arith.constant 0 : i32
    return %arg0, %c0_i32, %c0_i32_0 : i32, i32, i32
  }
}

</mosaic_0001>

<bundles_post_ra>
// kernel: tpu_custom_call.1
= control target key start
LH: loop header
LB: loop body
LE: loop exit
PB: predicated region body
PF: predicated region fallthrough
CT: control target
= control target key end

     0   :  { %17 = vsyncpa [#allocation3], 0  ;;  %s5485_s0 = inlined_call_operand.vmem [shape: f32[2,8,16], index: 0, kind: input, shape index: {}]   ;;  %s5486_s1 = inlined_call_operand.hbm [shape: f32[8,32], index: 1, kind: input, shape index: {}]   ;;  %s5487_s2 = inlined_call_operand.hbm [shape: bf16[16,32], index: 2, kind: input, shape index: {}]   ;;  %s5488_s3 = inlined_call_operand.vmem [shape: bf16[2,12,8,32], index: 3, kind: input, shape index: {}]   ;;  %s5489_s4 = inlined_call_operand.vmem [shape: f32[2,12,1,8], index: 4, kind: input, shape index: {}]   ;;  %s5490_s5 = inlined_call_operand.vmem [shape: bf16[2,4,8,32], index: 5, kind: input, shape index: {}]   ;;  %s5491_s6 = inlined_call_operand.vmem [shape: bf16[2,32,128], index: 6, kind: input, shape index: {}]   ;;  %s5492_s7 = inlined_call_operand.vmem [shape: bf16[2,128,32], index: 7, kind: input, shape index: {}]   ;;  %s5493_s8 = inlined_call_operand.vmem [shape: f32[2,8,128], index: 8, kind: input, shape index: {}]   ;;  %s5494_s9 = inlined_call_operand.vmem [shape: f32[8,32], index: 9, kind: input, shape index: {}]   ;;  %s5495_s10 = inlined_call_operand.vmem [shape: bf16[32,16], index: 10, kind: input, shape index: {}]   ;;  %s5496_s11 = inlined_call_operand.vmem [shape: bf16[16,4], index: 11, kind: input, shape index: {}]   ;;  %s5497_s12 = inlined_call_operand.hbm [shape: f32[2,1,4], index: 12, kind: output, shape index: {}]  }
   0x1   :  { %18 = vsyncpa [#allocation6], 0 }
   0x2   :  { %19 = vsyncpa [#allocation4], 0 }
   0x3   :  { %21 = vsyncpa [#allocation4 + $0x1], 0  ;;  %s4670_s21 = smov 0   ;;  %s4672_s22 = smov 0  }
   0x4   :  { %s4674_s23 = smov 0   ;;  %s4676_s24 = smov 0  }
   0x5 LB: > { %5505 = sst [smem:[#allocation11_spill]] %s4592_s23  ;;  %s4691_s25 = sadd.s32 4294967295, %s4596_s24   ;;  %s4596_s24 = sphi %s4676_s24, %s5521_s24   ;;  %s4592_s23 = sphi %s4674_s23, %s5523_s23   ;;  %s4588_s22 = sphi %s4672_s22, %s5525_s22   ;;  %s4584_s21 = sphi %s4670_s21, %s5524_s21  }
   0x6   : > { %s3687_s26 = sadd.s32 4294967294, %s4596_s24   ;;  %s4695_s27 = sadd.s32 1, %s4596_s24  }
   0x7   : > { %5506 = sst [smem:[#allocation12_spill]] %s4695_s27  ;;  %s291_s28 = sadd.s32 1, %s4592_s23 }
   0x8   : > { %s288_s29 = ssub.s32 %s4596_s24, %s4695_s27  ;;  %p301_p0 = scmp.ne.s32.totalorder %s4592_s23, %s4588_s22 }
   0x9   : > { %p289_p1 = scmp.eq.s32.totalorder %s288_s29, 0  ;;  %p302_p2 = scmp.eq.s32.totalorder %s4691_s25, 1 }
   0xa   : > { %p307_p3 = scmp.ne.s32.totalorder %s4588_s22, %s4584_s21  ;;  %p308_p4 = scmp.eq.s32.totalorder %s3687_s26, 1 }
   0xb   : > { %s4706_s30 = scalar_select %p289_p1, %s4592_s23, %s291_s28  }
   0xc   : > { %p4708_p5 = por %p302_p2, %p301_p0  ;;  %p4712_p6 = por %p308_p4, %p307_p3 }
   0xd   : > { %5507 = sst [smem:[#allocation13_spill]] %s4706_s30  ;;  %p3688_p7 = scmp.ge.s32.totalorder %s4596_s24, 1 }
   0xe   : > { %s5508_s13 = scalar_select %p4708_p5, 1, 0 }
   0xf   : > { %s5509_s14 = scalar_select %p4712_p6, 1, 0 }
  0x10   : > { %p315_p8 = scmp.lt.s32.totalorder %s4596_s24, 3  ;;  %p5501_p9 = scmp.eq.s32.totalorder %s4691_s25, 0 }
  0x11   : > { %5510 = sst [smem:[#allocation14_spill]] %s5509_s14  ;;  %s4598_s16 = smov [#allocation2]  }
  0x12   : > { %p4719_p10 = pnand %p3688_p7, %p315_p8  ;;  %s328_s17 = sshll.u32 %s4598_s16, 4  ;;  %s329_s17 = int_to_ptr.vmem [resolvable:$true] %s328_s17 }
  0x13   : > { %s4599_s18 = smov [#allocation5]   ;;  %s4470_s29 = scalar_lea.hbm %s5486_s1, 128 }
  0x14   : > { %s5511_s15 = scalar_select %p4719_p10, 1, 0 }
  0x15   : > { %p4350_p11 = pneg %p4719_p10  ;;  %s338_s19 = sshll.u32 %s4599_s18, 4  ;;  %s4731_s19 = int_to_ptr.vmem [resolvable:$true] %s338_s19 }
  0x16   : > { %p4471_p13 = scmp.ne.s32.totalorder %s5486_s1, %s4470_s29  ;;  %p4477_p3 = scmp.lt.u32.totalorder %s4470_s29, %s5486_s1 }
  0x17   : > { %p4727_p12 = pnand %p5501_p9, %p4350_p11 }
  0x19   : > { %p4472_p0 = pneg %p4727_p12 }
  0x1b   : > { %p4473_p1 = pnand %p4472_p0, %p4471_p13 }
  0x1d   : > { %p4474_p2 = pneg %p4473_p1 }
  0x1f   : > { %p4479_p4 = pnand %p4477_p3, %p4474_p2 }
  0x21   : > { %4482 = shalt.err (!%p4479_p4)
}
  0x22   : > { %s4483_s27 = scalar_lea.vmem %s329_s17, 128  ;;  %p4491_p9 = scmp.lt.s32.totalorder %s329_s17, %s329_s17 }
  0x23   : > { %p4484_p7 = scmp.ne.s32.totalorder %s329_s17, %s4483_s27  ;;  %p4492_p6 = scmp.lt.s32.totalorder %s4483_s27, %s4483_s27 }
  0x25   : > { %p4486_p8 = pnand %p4484_p7, %p4472_p0  ;;  %p4493_p5 = por %p4492_p6, %p4491_p9 }
  0x27   : > { %p4487_p11 = pneg %p4486_p8 }
  0x29   : > { %p4494_p10 = pnand %p4493_p5, %p4487_p11 }
  0x2b   : > { %4497 = shalt.err (!%p4494_p10)
}
  0x2c   : > { %4353 = dma.hbm_to_vmem [thread:$0]  (!%p4727_p12), %s5486_s1, 128, %s329_s17, [#allocation3]  }
  0x2d   : > { %s4498_s29 = scalar_lea.hbm %s5487_s2, 128 }
  0x2e   : > { %p4499_p13 = scmp.ne.s32.totalorder %s5487_s2, %s4498_s29  ;;  %p4505_p9 = scmp.lt.u32.totalorder %s4498_s29, %s5487_s2 }
  0x30   : > { %p4501_p6 = pnand %p4499_p13, %p4472_p0 }
  0x32   : > { %p4502_p5 = pneg %p4501_p6 }
  0x34   : > { %p4507_p10 = pnand %p4505_p9, %p4502_p5 }
  0x36   : > { %4510 = shalt.err (!%p4507_p10)
}
  0x37   : > { %s4511_s17 = scalar_lea.vmem %s4731_s19, 128  ;;  %p4519_p4 = scmp.lt.s32.totalorder %s4731_s19, %s4731_s19 }
  0x38   : > { %p4512_p1 = scmp.ne.s32.totalorder %s4731_s19, %s4511_s17  ;;  %p4520_p7 = scmp.lt.s32.totalorder %s4511_s17, %s4511_s17 }
  0x3a   : > { %p4514_p2 = pnand %p4512_p1, %p4472_p0  ;;  %p4521_p8 = por %p4520_p7, %p4519_p4 }
  0x3c   : > { %p4515_p3 = pneg %p4514_p2 }
  0x3e   : > { %p4522_p11 = pnand %p4521_p8, %p4515_p3 }
  0x40   : > { %4525 = shalt.err (!%p4522_p11)
}
  0x41   : > { %s4600_s14 = smov 64   ;;  %s4601_s30 = smov 4  }
  0x42   : > { %4356 = dma.hbm_to_vmem [thread:$0]  (!%p4727_p12), %s5487_s2, 128, %s4731_s19, [#allocation6], %s4600_s14, %s4600_s14, %s4601_s30  }
  0x43   : > { %p5513_p13 = scmp.ne.s32.totalorder %s5511_s15, 0 }
  0x44   : > { %p5514_p0 = scmp.eq.s32.totalorder (!%p5513_p13), %s4691_s25, 0 }
  0x45   : > { %388 = sbr.rel (%p5513_p13) target bundleno = 5649 (0x1611), region = 68 }
  0x4c   : > { %4571 = dma.done.wait (%p5514_p0), [#allocation3], 128   ;;  %p5515_p6 = pmov %p5514_p0 }
  0x4d   : > { %p5516_p5 = pmov %p5514_p0 }
  0x4e   : > { %4573 = vsyncadd (%p5515_p6), [#allocation3], 4294967168 }
  0x4f   : > { %4575 = dma.done.wait (%p5516_p5), [#allocation6], 128   ;;  %p5517_p9 = pmov %p5514_p0 }
  0x50   : > { %p432_p10 = scmp.lt.s32.totalorder %s4691_s25, 1  ;;  %v4602_v0 = vmov 0.0   ;;  %vm4603_vm0 = vmmov 0   ;;  %vm590_vm1 = vcmask 261120   ;;  %v4404_v1 = vld [vmem:[#allocation5] sm:$0xff]   ;;  %vm448_vm2 = vcmask 130048  }
  0x51   : > { %4577 = vsyncadd (%p5517_p9), [#allocation6], 4294967168  ;;  %3976 = vmatprep.subr.bf16.mxu0 %v4602_v0  ;;  %3978 = vmatprep.mubr.msk.bf16.mxu0 %vm4603_vm0, %v4602_v0  ;;  %v494_v3 = vld [vmem:[%s5488_s3] sm:$0xf]  ;;  %v496_v4 = vld [vmem:[%s5488_s3 + $0x8] sm:$0xf] }
  0x52   : > { %s433_s15 = scalar_select %p432_p10, %s4691_s25, 1  ;;  %3994 = vmatprep.subr.bf16.mxu1 %v4602_v0  ;;  %3996 = vmatprep.mubr.msk.bf16.mxu1 %vm4603_vm0, %v4602_v0  ;;  %v595_v6 = vsel %vm590_vm1, %v494_v3, 0  ;;  %v681_v7 = vsel %vm590_vm1, %v496_v4, 0  ;;  %v441_v8 = vld [vmem:[#allocation2] sm:$0xff]  ;;  %v498_v11 = vld [vmem:[%s5488_s3 + $0x10] sm:$0xf] }
  0x53   : > { %3977 = vmatpush3.bf16.msra.mxu0 %v4404_v1  ;;  %3995 = vmatpush3.bf16.xpose.msra.mxu1 %v681_v7  ;;  %v495_v10 = vld [vmem:[%s5488_s3 + $0x4] sm:$0xf]  ;;  %v767_v18 = vsel %vm590_vm1, %v498_v11, 0  ;;  %v497_v19 = vld [vmem:[%s5488_s3 + $0xc] sm:$0xf]  ;;  %vm1122_vm3 = vcmask 64512  }
  0x54   : > { %s3695_s19 = sshll.u32 %s433_s15, 3  ;;  %3982 = vmatprep.subr.bf16.mxu0 %v4602_v0  ;;  %4006 = vmatprep.subr.bf16.mxu1 %v4602_v0  ;;  %v638_v17 = vsel %vm590_vm1, %v495_v10, 0  ;;  %v500_v20 = vld [vmem:[%s5488_s3 + $0x18] sm:$0xf]  ;;  %v724_v21 = vsel %vm590_vm1, %v497_v19, 0  ;;  %vm1358_vm4 = vcmask 1043456  }
  0x55   : > { %s435_s29 = scalar_lea.vmem %s5485_s0, %s3695_s19  ;;  %v853_v22 = vsel %vm590_vm1, %v500_v20, 0  ;;  %v499_v23 = vld [vmem:[%s5488_s3 + $0x14] sm:$0xf]  ;;  %v502_v24 = vld [vmem:[%s5488_s3 + $0x20] sm:$0xf]  ;;  %s430_s15 = sand.u32 1, %s4588_s22  }
  0x56   : > { %v437_v2 = vld [vmem:[%s435_s29] sm:$0xff]  ;;  %v810_v25 = vsel %vm590_vm1, %v499_v23, 0  ;;  %v939_v26 = vsel %vm590_vm1, %v502_v24, 0  ;;  %v501_v27 = vld [vmem:[%s5488_s3 + $0x1c] sm:$0xf]  ;;  %s3846_s19 = sshll.u32 %s4691_s25, 4 }
  0x57   : > { %v438_v5 = vpack.c.bf16 %v437_v2, %v437_v2  ;;  %v504_v28 = vld [vmem:[%s5488_s3 + $0x28] sm:$0xf]  ;;  %v896_v29 = vsel %vm590_vm1, %v501_v27, 0  ;;  %v503_v31 = vld [vmem:[%s5488_s3 + $0x24] sm:$0xf]  ;;  %s431_s20 = scalar_lea.vmem [#allocation7], %s430_s15  ;;  %s5443_s18 = scalar_lea.hbm %s5497_s12, %s3846_s19 }
  0x58   : > { %v1025_v30 = vsel %vm590_vm1, %v504_v28, 0  ;;  %v982_v32 = vsel %vm590_vm1, %v503_v31, 0  ;;  %v505_v33 = vld [vmem:[%s5488_s3 + $0x2c] sm:$0xf]  ;;  %v3702_v43 = vld [vmem:[%s5489_s4 + $0x4] ss:$0 sm:$0xff] }
  0x59   : > { %3979 = vmatmul.mubr.msk.bf16.vlgmr.msra.gmra.mrb[0].mxu0 %vm448_vm2, %v438_v5  ;;  %v1068_v34 = vsel %vm590_vm1, %v505_v33, 0  ;;  %v3698_v54 = vld [vmem:[%s5489_s4] ss:$0 sm:$0xff]  ;;  %v3704_v56 = vld [vmem:[%s5489_s4 + $0x6] ss:$0 sm:$0xff]  ;;  %s3610_s28 = sshll.u32 %s431_s20, 4  ;;  %s5445_s28 = int_to_ptr.vmem [resolvable:$true] %s3610_s28 }
  0x5a   : > { %3984 = vmatprep.mubr.msk.bf16.mxu0 %vm4603_vm0, %v4602_v0  ;;  %v3705_v28 = vld [vmem:[%s5489_s4 + $0x7] ss:$0 sm:$0xff]  ;;  %vm3595_vm5 = vcmask 24576   ;;  %s3598_s25 = scalar_lea.sflag [#allocation4], %s430_s15  ;;  %s4526_s27 = scalar_lea.vmem %s5445_s28, 16 }
  0x5b   : > { %p4527_p12 = scmp.ne.s32.totalorder %s5445_s28, %s4526_s27  ;;  %p5518_p1 = scmp.ne.s32.totalorder %s5508_s13, 0 }
  0x5c   : > { %3983 = vmatpush3.bf16.xpose.msra.mxu0 %v595_v6  ;;  %v3700_v6 = vld [vmem:[%s5489_s4 + $0x2] ss:$0 sm:$0xff]  ;;  %s4604_s17 = smov [#allocation7]  }
  0x5d   : > { %3988 = vmatprep.subr.bf16.mxu0 %v4602_v0  ;;  %p4528_p2 = pnand %p4527_p12, %p5518_p1  ;;  %s4530_s14 = sshll.u32 %s4604_s17, 4  ;;  %s4531_s14 = int_to_ptr.vmem [resolvable:$false] %s4530_s14 }
  0x5e   : > { %s4532_s30 = scalar_lea.vmem %s4531_s14, 32  ;;  %p4533_p4 = scmp.lt.s32.totalorder %s5445_s28, %s4531_s14 }
  0x5f   : > { %p4529_p3 = pneg %p4528_p2  ;;  %p4534_p7 = scmp.lt.s32.totalorder %s4532_s30, %s4526_s27 }
  0x61   : > { %p4535_p8 = por %p4534_p7, %p4533_p4 }
  0x63   : > { %p4536_p11 = pnand %p4535_p8, %p4529_p3 }
 0x12c   : > { %v486_v9 = vpop.f32.mrb[0].mxu0 }
 0x12d   : > { %v4821_v12 = vadd.f32 %v486_v9, %v441_v8  ;;  %v3980_v13 = vpop.f32.mrb[1].mxu0  ;;  %v3703_v8 = vld [vmem:[%s5489_s4 + $0x5] ss:$0 sm:$0xff]  ;;  %v3706_v9 = vld [vmem:[%s5489_s4 + $0x8] ss:$0 sm:$0xff] }
 0x12e   : > { %v489_v14 = vpop.f32.mrb[2].mxu0 }
 0x12f   : > { %v493_v15 = vpack.c.bf16 %v4821_v12, %v4821_v12  ;;  %v3981_v16 = vpop.f32.mrb[3].mxu0 }
 0x131   : > { %3985 = vmatmul.mubr.msk.bf16.vlgmr.msra.gmra.mrb[4].mxu0 %vm590_vm1, %v493_v15  ;;  %3997 = vmatmul.mubr.msk.bf16.vlgmr.msra.gmra.mrb[0].mxu1 %vm590_vm1, %v493_v15 }
 0x132   : > { %3989 = vmatpush3.bf16.xpose.msra.mxu0 %v638_v17  ;;  %4007 = vmatpush3.bf16.xpose.msra.mxu1 %v767_v18 }
 0x133   : > { %3990 = vmatprep.mubr.msk.bf16.mxu0 %vm4603_vm0, %v4602_v0  ;;  %4008 = vmatprep.mubr.msk.bf16.mxu1 %vm4603_vm0, %v4602_v0 }
 0x134   : > { %4000 = vmatprep.subr.bf16.mxu0 %v4602_v0  ;;  %4018 = vmatprep.subr.bf16.mxu1 %v4602_v0 }
 0x139   : > { %3991 = vmatmul.mubr.msk.bf16.vlgmr.msra.gmra.mrb[8].mxu0 %vm590_vm1, %v493_v15  ;;  %4009 = vmatmul.mubr.msk.bf16.vlgmr.msra.gmra.mrb[4].mxu1 %vm590_vm1, %v493_v15 }
 0x13a   : > { %4001 = vmatpush3.bf16.xpose.msra.mxu0 %v724_v21  ;;  %4019 = vmatpush3.bf16.xpose.msra.mxu1 %v853_v22 }
 0x13b   : > { %4002 = vmatprep.mubr.msk.bf16.mxu0 %vm4603_vm0, %v4602_v0  ;;  %4020 = vmatprep.mubr.msk.bf16.mxu1 %vm4603_vm0, %v4602_v0 }
 0x13c   : > { %4012 = vmatprep.subr.bf16.mxu0 %v4602_v0  ;;  %4030 = vmatprep.subr.bf16.mxu1 %v4602_v0 }
 0x141   : > { %4003 = vmatmul.mubr.msk.bf16.vlgmr.msra.gmra.mrb[12].mxu0 %vm590_vm1, %v493_v15  ;;  %4021 = vmatmul.mubr.msk.bf16.vlgmr.msra.gmra.mrb[8].mxu1 %vm590_vm1, %v493_v15 }
 0x142   : > { %4013 = vmatpush3.bf16.xpose.msra.mxu0 %v810_v25  ;;  %4031 = vmatpush3.bf16.xpose.msra.mxu1 %v939_v26  ;;  %v3699_v25 = vld [vmem:[%s5489_s4 + $0x1] ss:$0 sm:$0xff] }
 0x143   : > { %4014 = vmatprep.mubr.msk.bf16.mxu0 %vm4603_vm0, %v4602_v0  ;;  %4032 = vmatprep.mubr.msk.bf16.mxu1 %vm4603_vm0, %v4602_v0 }
 0x144   : > { %4024 = vmatprep.subr.bf16.mxu0 %v4602_v0  ;;  %4042 = vmatprep.subr.bf16.mxu1 %v4602_v0 }
 0x149   : > { %4015 = vmatmul.mubr.msk.bf16.vlgmr.msra.gmra.mrb[16].mxu0 %vm590_vm1, %v493_v15  ;;  %4033 = vmatmul.mubr.msk.bf16.vlgmr.msra.gmra.mrb[12].mxu1 %vm590_vm1, %v493_v15 }
 0x14a   : > { %4025 = vmatpush3.bf16.xpose.msra.mxu0 %v896_v29  ;;  %4043 = vmatpush3.bf16.xpose.msra.mxu1 %v1025_v30 }
 0x14b   : > { %4026 = vmatprep.mubr.msk.bf16.mxu0 %vm4603_vm0, %v4602_v0  ;;  %4044 = vmatprep.mubr.msk.bf16.mxu1 %vm4603_vm0, %v4602_v0 }
 0x14c   : > { %4036 = vmatprep.subr.bf16.mxu0 %v4602_v0  ;;  %4054 = vmatprep.subr.bf16.mxu1 %v4602_v0 }
 0x151   : > { %4027 = vmatmul.mubr.msk.bf16.vlgmr.msra.gmra.mrb[20].mxu0 %vm590_vm1, %v493_v15  ;;  %4045 = vmatmul.mubr.msk.bf16.vlgmr.msra.gmra.mrb[16].mxu1 %vm590_vm1, %v493_v15 }
 0x152   : > { %4037 = vmatpush3.bf16.xpose.msra.mxu0 %v982_v32  ;;  %4038 = vmatprep.mubr.msk.bf16.mxu0 %vm4603_vm0, %v4602_v0 }
 0x153   : > { %4048 = vmatprep.subr.bf16.mxu0 %v4602_v0  ;;  %4056 = vmatprep.mubr.msk.bf16.mxu1 %vm4603_vm0, %v4602_v0 }
 0x159   : > { %4039 = vmatmul.mubr.msk.bf16.vlgmr.msra.gmra.mrb[24].mxu0 %vm590_vm1, %v493_v15 }
 0x15a   : > { %4049 = vmatpush3.bf16.xpose.msra.mxu0 %v1068_v34  ;;  %4050 = vmatprep.mubr.msk.bf16.mxu0 %vm4603_vm0, %v4602_v0 }
 0x15b   : > { %4060 = vmatprep.subr.bf16.mxu0 %v4602_v0 }
 0x161   : > { %4051 = vmatmul.mubr.msk.bf16.vlgmr.msra.gmra.mrb[28].mxu0 %vm590_vm1, %v493_v15 }
 0x162   : > { %4062 = vmatprep.mubr.msk.bf16.mxu0 %vm4603_vm0, %v4602_v0 }
 0x204   : > { %v631_v35 = vpop.f32.mrb[4].mxu0  ;;  %v717_v36 = vpop.f32.mrb[0].mxu1 }
 0x205   : > { %v3986_v37 = vpop.f32.mrb[5].mxu0  ;;  %v3998_v38 = vpop.f32.mrb[1].mxu1  ;;  %v632_v57 = vadd.f32 %v3698_v54, %v631_v35  ;;  %v718_v10 = vadd.f32 %v3700_v6, %v717_v36 }
 0x206   : > { %v634_v39 = vpop.f32.mrb[6].mxu0  ;;  %v720_v40 = vpop.f32.mrb[2].mxu1 }
 0x207   : > { %v3987_v41 = vpop.f32.mrb[7].mxu0  ;;  %v3999_v42 = vpop.f32.mrb[3].mxu1  ;;  %v1110_v2 = vpack.c.bf16 %v632_v57, %v632_v57  ;;  %v1112_v20 = vpack.c.bf16 %v718_v10, %v718_v10 }
 0x208   : > { %v3701_v41 = vld [vmem:[%s5489_s4 + $0x3] ss:$0 sm:$0xff] }
 0x20c   : > { %v674_v44 = vpop.f32.mrb[8].mxu0  ;;  %v803_v45 = vpop.f32.mrb[4].mxu1 }
 0x20d   : > { %v804_v46 = vadd.f32 %v3702_v43, %v803_v45  ;;  %v3992_v47 = vpop.f32.mrb[9].mxu0  ;;  %v4010_v48 = vpop.f32.mrb[5].mxu1  ;;  %v675_v29 = vadd.f32 %v3699_v25, %v674_v44  ;;  %v3707_v43 = vld [vmem:[%s5489_s4 + $0x9] ss:$0 sm:$0xff] }
 0x20e   : > { %v677_v49 = vpop.f32.mrb[10].mxu0  ;;  %v806_v50 = vpop.f32.mrb[6].mxu1 }
 0x20f   : > { %v1114_v51 = vpack.c.bf16 %v804_v46, %v804_v46  ;;  %v3993_v52 = vpop.f32.mrb[11].mxu0  ;;  %v4011_v53 = vpop.f32.mrb[7].mxu1  ;;  %v1111_v37 = vpack.c.bf16 %v675_v29, %v675_v29 }
 0x211   : > { %v1127_v55 = vsel %vm1122_vm3, %v1114_v51, 0 }
 0x212   : > { %4055 = vmatpush3.bf16.xpose.msra.mxu1 %v1127_v55 }
 0x213   : > { %4066 = vmatprep.subr.bf16.mxu1 %v4602_v0 }
 0x214   : > { %v760_v58 = vpop.f32.mrb[12].mxu0  ;;  %v889_v59 = vpop.f32.mrb[8].mxu1 }
 0x215   : > { %v890_v60 = vadd.f32 %v3704_v56, %v889_v59  ;;  %v4004_v61 = vpop.f32.mrb[13].mxu0  ;;  %v4022_v62 = vpop.f32.mrb[9].mxu1  ;;  %v761_v44 = vadd.f32 %v3701_v41, %v760_v58 }
 0x216   : > { %v763_v63 = vpop.f32.mrb[14].mxu0  ;;  %v892_v1 = vpop.f32.mrb[10].mxu1 }
 0x217   : > { %v1116_v3 = vpack.c.bf16 %v890_v60, %v890_v60  ;;  %v4005_v4 = vpop.f32.mrb[15].mxu0  ;;  %v4023_v5 = vpop.f32.mrb[11].mxu1  ;;  %v1113_v49 = vpack.c.bf16 %v761_v44, %v761_v44 }
 0x219   : > { %v1219_v7 = vsel %vm1122_vm3, %v1116_v3, 0  ;;  %4057 = vmatmul.mubr.msk.bf16.vlgmr.msra.gmra.mrb[20].mxu1 %vm1122_vm3, %v1110_v2 }
 0x21a   : > { %4067 = vmatpush3.bf16.xpose.msra.mxu1 %v1219_v7  ;;  %4068 = vmatprep.mubr.msk.bf16.mxu1 %vm4603_vm0, %v4602_v0 }
 0x21b   : > { %4078 = vmatprep.subr.bf16.mxu1 %v4602_v0 }
 0x21c   : > { %v846_v11 = vpop.f32.mrb[16].mxu0  ;;  %v975_v13 = vpop.f32.mrb[12].mxu1 }
 0x21d   : > { %v847_v14 = vadd.f32 %v3703_v8, %v846_v11  ;;  %v976_v15 = vadd.f32 %v3706_v9, %v975_v13  ;;  %v4016_v16 = vpop.f32.mrb[17].mxu0  ;;  %v4034_v17 = vpop.f32.mrb[13].mxu1 }
 0x21e   : > { %v849_v18 = vpop.f32.mrb[18].mxu0  ;;  %v978_v19 = vpop.f32.mrb[14].mxu1 }
 0x21f   : > { %v1115_v21 = vpack.c.bf16 %v847_v14, %v847_v14  ;;  %v1118_v22 = vpack.c.bf16 %v976_v15, %v976_v15  ;;  %v4017_v23 = vpop.f32.mrb[19].mxu0  ;;  %v4035_v24 = vpop.f32.mrb[15].mxu1 }
 0x221   : > { %v1173_v26 = vsel %vm1122_vm3, %v1115_v21, 0  ;;  %v1360_v27 = vsel %vm1358_vm4, %v1118_v22, 0  ;;  %4069 = vmatmul.mubr.msk.bf16.vlgmr.msra.gmra.mrb[24].mxu1 %vm1122_vm3, %v1112_v20 }
 0x222   : > { %4061 = vmatpush3.bf16.xpose.msra.mxu0 %v1173_v26  ;;  %4079 = vmatpush3.bf16.msra.mxu1 %v1360_v27 }
 0x223   : > { %4072 = vmatprep.subr.bf16.mxu0 %v4602_v0  ;;  %4080 = vmatprep.mubr.msk.bf16.mxu1 %vm4603_vm0, %v4602_v0 }
 0x224   : > { %v932_v30 = vpop.f32.mrb[20].mxu0  ;;  %v4942_v31 = vpop.f32.mrb[16].mxu1  ;;  %4090 = vmatprep.subr.bf16.mxu1 %v4602_v0 }
 0x225   : > { %v933_v32 = vadd.f32 %v3705_v28, %v932_v30  ;;  %v4028_v33 = vpop.f32.mrb[21].mxu0  ;;  %v4046_v34 = vpop.f32.mrb[17].mxu1 }
 0x226   : > { %v935_v35 = vpop.f32.mrb[22].mxu0  ;;  %v1064_v36 = vpop.f32.mrb[18].mxu1 }
 0x227   : > { %v1117_v38 = vpack.c.bf16 %v933_v32, %v933_v32  ;;  %v4029_v39 = vpop.f32.mrb[23].mxu0  ;;  %v4047_v40 = vpop.f32.mrb[19].mxu1 }
 0x229   : > { %v1265_v42 = vsel %vm1122_vm3, %v1117_v38, 0  ;;  %4063 = vmatmul.mubr.msk.bf16.vlgmr.msra.gmra.mrb[32].mxu0 %vm1122_vm3, %v1111_v37  ;;  %v3708_v37 = vld [vmem:[%s5489_s4 + $0xa] ss:$0 sm:$0xff] }
 0x22a   : > { %4073 = vmatpush3.bf16.xpose.msra.mxu0 %v1265_v42  ;;  %4074 = vmatprep.mubr.msk.bf16.mxu0 %vm4603_vm0, %v4602_v0  ;;  %v1062_v38 = vadd.f32 %v3708_v37, %v4942_v31 }
 0x22b   : > { %4084 = vmatprep.subr.bf16.mxu0 %v4602_v0 }
 0x22c   : > { %v1018_v45 = vpop.f32.mrb[24].mxu0  ;;  %v1120_v41 = vpack.c.bf16 %v1062_v38, %v1062_v38 }
 0x22d   : > { %v1019_v46 = vadd.f32 %v3707_v43, %v1018_v45  ;;  %v4040_v47 = vpop.f32.mrb[25].mxu0 }
 0x22e   : > { %v1021_v48 = vpop.f32.mrb[26].mxu0  ;;  %v1452_v44 = vsel %vm1358_vm4, %v1120_v41, 0  ;;  %v3709_v47 = vld [vmem:[%s5489_s4 + $0xb] ss:$0 sm:$0xff] }
 0x22f   : > { %v1119_v50 = vpack.c.bf16 %v1019_v46, %v1019_v46  ;;  %v4041_v51 = vpop.f32.mrb[27].mxu0 }
 0x231   : > { %v1406_v52 = vsel %vm1358_vm4, %v1119_v50, 0  ;;  %4075 = vmatmul.mubr.msk.bf16.vlgmr.msra.gmra.mrb[36].mxu0 %vm1122_vm3, %v1113_v49 }
 0x232   : > { %4085 = vmatpush3.bf16.msra.mxu0 %v1406_v52  ;;  %4086 = vmatprep.mubr.msk.bf16.mxu0 %vm4603_vm0, %v4602_v0 }
 0x233   : > { %4096 = vmatprep.subr.bf16.mxu0 %v4602_v0 }
 0x234   : > { %v4961_v53 = vpop.f32.mrb[28].mxu0 }
 0x235   : > { %v4052_v54 = vpop.f32.mrb[29].mxu0  ;;  %v1105_v49 = vadd.f32 %v3709_v47, %v4961_v53 }
 0x236   : > { %v1107_v55 = vpop.f32.mrb[30].mxu0 }
 0x237   : > { %v4053_v56 = vpop.f32.mrb[31].mxu0  ;;  %v1121_v52 = vpack.c.bf16 %v1105_v49, %v1105_v49 }
 0x239   : > { %v1498_v56 = vsel %vm1358_vm4, %v1121_v52, 0 }
 0x2ec   : > { %v1163_v57 = vpop.f32.mrb[20].mxu1 }
 0x2ed   : > { %v4058_v58 = vpop.f32.mrb[21].mxu1  ;;  %v1307_v59 = vsel %vm1122_vm3, %v1163_v57, -inf }
 0x2ee   : > { %1308 = vmax.xlane.f32.xlu0 %v1307_v59  ;;  %v1166_v60 = vpop.f32.mrb[22].mxu1  ;;  %v1544_v59 = vld [vmem:[%s5490_s5] sm:$0xf] }
 0x2ef   : > { %v4059_v61 = vpop.f32.mrb[23].mxu1  ;;  %v1552_v60 = vsel %vm1358_vm4, %v1544_v59, 0 }
 0x2f0   : > { %v1545_v61 = vld [vmem:[%s5490_s5 + $0x4] sm:$0xf] }
 0x2f4   : > { %v1255_v62 = vpop.f32.mrb[24].mxu1 }
 0x2f5   : > { %v4070_v63 = vpop.f32.mrb[25].mxu1  ;;  %v1313_v1 = vsel %vm1122_vm3, %v1255_v62, -inf }
 0x2f6   : > { %1314 = vmax.xlane.f32.xlu1 %v1313_v1  ;;  %v1258_v2 = vpop.f32.mrb[26].mxu1  ;;  %v1546_v63 = vld [vmem:[%s5490_s5 + $0x8] sm:$0xf] }
 0x2f7   : > { %v4071_v3 = vpop.f32.mrb[27].mxu1 }
 0x2fc   : > { %v1209_v4 = vpop.f32.mrb[32].mxu0 }
 0x2fd   : > { %v4064_v5 = vpop.f32.mrb[33].mxu0  ;;  %v1310_v6 = vsel %vm1122_vm3, %v1209_v4, -inf }
 0x2fe   : > { %1311 = vmax.xlane.f32.xlu0 %v1310_v6  ;;  %v1212_v7 = vpop.f32.mrb[34].mxu0 }
 0x2ff   : > { %v4065_v8 = vpop.f32.mrb[35].mxu0 }
 0x304   : > { %v1301_v9 = vpop.f32.mrb[36].mxu0 }
 0x305   : > { %v4076_v10 = vpop.f32.mrb[37].mxu0  ;;  %v1316_v11 = vsel %vm1122_vm3, %v1301_v9, -inf }
 0x306   : > { %1317 = vmax.xlane.f32.xlu1 %v1316_v11  ;;  %v1304_v13 = vpop.f32.mrb[38].mxu0 }
 0x307   : > { %v4077_v14 = vpop.f32.mrb[39].mxu0  ;;  %v1547_v13 = vld [vmem:[%s5490_s5 + $0xc] sm:$0xf] }
 0x37b   : > { %v1309_v15 = vpop.xlane.xlu0 %1308 }
 0x37c   : > { %v1319_v16 = vsub.f32 %v1163_v57, %v1309_v15 }
 0x37e   : > { %v1323_v17 = vmul.f32 1.442695, %v1319_v16 }
 0x380   : > { %4428 = vpow2.f32 %v1323_v17  ;;  %v1690_v17 = vsel %vm1358_vm4, %v1547_v13, 0 }
 0x383   : > { %v1315_v18 = vpop.xlane.xlu1 %1314 }
 0x384   : > { %v1321_v19 = vsub.f32 %v1255_v62, %v1315_v18  ;;  %v1598_v62 = vsel %vm1358_vm4, %v1545_v61, 0  ;;  %v4405_v61 = vld [vmem:[%s5491_s6] sm:$0xff]  }
 0x386   : > { %v1327_v20 = vmul.f32 1.442695, %v1321_v19 }
 0x388   : > { %4430 = vpow2.f32 %v1327_v20 }
 0x38a   : > { %v4429_v21 = vpop.eup %4428 }
 0x38b   : > { %v1312_v22 = vpop.xlane.xlu0 %1311  ;;  %v1331_v23 = vsel %vm1122_vm3, %v4429_v21, 0.0 }
 0x38c   : > { %v1320_v24 = vsub.f32 %v1209_v4, %v1312_v22  ;;  %1332 = vadd.xlane.f32.xlu0 %v1331_v23  ;;  %v1644_v4 = vsel %vm1358_vm4, %v1546_v63, 0  ;;  %v4408_v63 = vld [vmem:[%s5492_s7 + $0x8] sm:$0xff]  }
 0x38e   : > { %v1325_v25 = vmul.f32 1.442695, %v1320_v24 }
 0x390   : > { %4432 = vpow2.f32 %v1325_v25 }
 0x392   : > { %v4431_v26 = vpop.eup %4430 }
 0x393   : > { %v1318_v27 = vpop.xlane.xlu1 %1317  ;;  %v1337_v28 = vsel %vm1122_vm3, %v4431_v26, 0.0 }
 0x394   : > { %v1322_v29 = vsub.f32 %v1301_v9, %v1318_v27  ;;  %1338 = vadd.xlane.f32.xlu0 %v1337_v28 }
 0x396   : > { %v1329_v30 = vmul.f32 1.442695, %v1322_v29 }
 0x398   : > { %4434 = vpow2.f32 %v1329_v30 }
 0x39a   : > { %v4433_v32 = vpop.eup %4432 }
 0x39b   : > { %v1334_v33 = vsel %vm1122_vm3, %v4433_v32, 0.0 }
 0x39c   : > { %1335 = vadd.xlane.f32.xlu1 %v1334_v33 }
 0x3a2   : > { %v4435_v34 = vpop.eup %4434 }
 0x3a3   : > { %v1340_v35 = vsel %vm1122_vm3, %v4435_v34, 0.0 }
 0x3a4   : > { %1341 = vadd.xlane.f32.xlu1 %v1340_v35 }
 0x419   : > { %v1333_v36 = vpop.xlane.xlu0 %1332 }
 0x41a   : > { %4436 = vrcp.f32 %v1333_v36 }
 0x421   : > { %v1339_v39 = vpop.xlane.xlu0 %1338 }
 0x422   : > { %4438 = vrcp.f32 %v1339_v39 }
 0x424   : > { %v4437_v40 = vpop.eup %4436 }
 0x425   : > { %v1347_v42 = vmul.f32 %v4437_v40, %v4429_v21 }
 0x427   : > { %v1351_v43 = vpack.c.bf16 %v1347_v42, %v1347_v42 }
 0x429   : > { %4081 = vmatmul.mubr.msk.bf16.vlgmr.msra.gmra.mrb[28].mxu1 %vm1122_vm3, %v1351_v43  ;;  %v1336_v45 = vpop.xlane.xlu1 %1335 }
 0x42a   : > { %4091 = vmatpush3.bf16.msra.mxu1 %v1452_v44  ;;  %4440 = vrcp.f32 %v1336_v45  ;;  %4092 = vmatprep.mubr.msk.bf16.mxu1 %vm4603_vm0, %v4602_v0 }
 0x42b   : > { %4102 = vmatprep.subr.bf16.mxu1 %v4602_v0 }
 0x42c   : > { %v4439_v46 = vpop.eup %4438 }
 0x42d   : > { %v1349_v31 = vmul.f32 %v4439_v46, %v4431_v26  ;;  %v5038_v46 = vld [vmem:[%s5493_s8] sm:$0xff] }
 0x42f   : > { %v1353_v48 = vpack.c.bf16 %v1349_v31, %v1349_v31 }
 0x431   : > { %4093 = vmatmul.mubr.msk.bf16.vlgmr.msra.gmra.mrb[32].mxu1 %vm1122_vm3, %v1353_v48  ;;  %v1342_v50 = vpop.xlane.xlu1 %1341 }
 0x432   : > { %4442 = vrcp.f32 %v1342_v50  ;;  %4104 = vmatprep.mubr.msk.bf16.mxu1 %vm4603_vm0, %v4602_v0  ;;  %4103 = vmatpush3.bf16.msra.mxu1 %v1552_v60 }
 0x433   : > { %4114 = vmatprep.subr.bf16.mxu1 %v4602_v0 }
 0x434   : > { %v4441_v51 = vpop.eup %4440 }
 0x435   : > { %v1348_v54 = vmul.f32 %v4441_v51, %v4433_v32 }
 0x437   : > { %v1352_v55 = vpack.c.bf16 %v1348_v54, %v1348_v54 }
 0x439   : > { %4087 = vmatmul.mubr.msk.bf16.vlgmr.msra.gmra.mrb[40].mxu0 %vm1122_vm3, %v1352_v55 }
 0x43a   : > { %4097 = vmatpush3.bf16.msra.mxu0 %v1498_v56  ;;  %4098 = vmatprep.mubr.msk.bf16.mxu0 %vm4603_vm0, %v4602_v0 }
 0x43b   : > { %4108 = vmatprep.subr.bf16.mxu0 %v4602_v0 }
 0x43c   : > { %v4443_v53 = vpop.eup %4442 }
 0x43d   : > { %v1350_v57 = vmul.f32 %v4443_v53, %v4435_v34  ;;  %v1739_v34 = vlaneseq }
 0x43f   : > { %v1354_v58 = vpack.c.bf16 %v1350_v57, %v1350_v57  ;;  %v5027_v36 = vshrl.u32 %v1739_v34, 7 }
 0x441   : > { %4099 = vmatmul.mubr.msk.bf16.vlgmr.msra.gmra.mrb[44].mxu0 %vm1122_vm3, %v1354_v58  ;;  %v5033_v45 = vsub.s32 1, %v5027_v36 }
 0x442   : > { %4110 = vmatprep.mubr.msk.bf16.mxu0 %vm4603_vm0, %v4602_v0  ;;  %4109 = vmatpush3.bf16.msra.mxu0 %v1598_v62  ;;  %v4406_v62 = vld [vmem:[%s5491_s6 + $0x8] sm:$0xff]  }
 0x443   : > { %4120 = vmatprep.subr.bf16.mxu0 %v4602_v0  ;;  %v1742_v47 = vrot.slane %v5038_v46, %v5033_v45 }
 0x4fc   : > { %v1396_v1 = vpop.f32.mrb[28].mxu1 }
 0x4fd   : > { %v1540_v2 = vpack.c.bf16 %v1396_v1, %v1396_v1  ;;  %v4082_v3 = vpop.f32.mrb[29].mxu1  ;;  %v4409_v1 = vld [vmem:[%s5492_s7 + $0x10] sm:$0xff]  }
 0x4fe   : > { %v1399_v5 = vpop.f32.mrb[30].mxu1  ;;  %v4411_v3 = vld [vmem:[%s5492_s7 + $0x20] sm:$0xff]  }
 0x4ff   : > { %v4083_v6 = vpop.f32.mrb[31].mxu1  ;;  %4105 = vmatmul.mubr.msk.bf16.vlgmr.msra.gmra.mrb[36].mxu1 %vm1122_vm3, %v1540_v2  ;;  %v4410_v2 = vld [vmem:[%s5492_s7 + $0x18] sm:$0xff]  }
 0x500   : > { %4115 = vmatpush3.bf16.msra.mxu1 %v1644_v4  ;;  %4116 = vmatprep.mubr.msk.bf16.mxu1 %vm4603_vm0, %v4602_v0  ;;  %v4412_v4 = vld [vmem:[%s5492_s7 + $0x28] sm:$0xff]  }
 0x501   : > { %4126 = vmatprep.subr.bf16.mxu1 %v4602_v0 }
 0x504   : > { %v1488_v7 = vpop.f32.mrb[32].mxu1 }
 0x505   : > { %v1542_v8 = vpack.c.bf16 %v1488_v7, %v1488_v7  ;;  %v4094_v9 = vpop.f32.mrb[33].mxu1 }
 0x506   : > { %v1491_v10 = vpop.f32.mrb[34].mxu1  ;;  %v1766_v9 = vsub.s32 3, %v5027_v36 }
 0x507   : > { %v4095_v11 = vpop.f32.mrb[35].mxu1  ;;  %4117 = vmatmul.mubr.msk.bf16.vlgmr.msra.gmra.mrb[40].mxu1 %vm1122_vm3, %v1542_v8  ;;  %v1761_v8 = vsub.s32 2, %v5027_v36 }
 0x508   : > { %4130 = vmatprep.mubr.msk.bf16.mxu1 %vm4603_vm0, %v4602_v0  ;;  %4127 = vmatpush3.bf16.msra.mxu1 %v4405_v61  ;;  %v3752_v61 = vld [vmem:[%s5488_s3 + $0x48] sm:$0xf] }
 0x509   : > { %4128 = vmatprep.subr.bf16.mxu1 %v4602_v0  ;;  %v1762_v10 = vrot.slane %v5038_v46, %v1761_v8 }
 0x50c   : > { %v1442_v14 = vpop.f32.mrb[40].mxu0  ;;  %4129 = vmatpush3.bf16.msra.mxu1 %v4406_v62 }
 0x50d   : > { %v1541_v15 = vpack.c.bf16 %v1442_v14, %v1442_v14  ;;  %v4088_v16 = vpop.f32.mrb[41].mxu0  ;;  %4154 = vmatprep.subr.bf16.mxu1 %v4602_v0  ;;  %v1767_v14 = vrot.slane %v5038_v46, %v1766_v9 }
 0x50e   : > { %v1445_v18 = vpop.f32.mrb[42].mxu0 }
 0x50f   : > { %v4089_v19 = vpop.f32.mrb[43].mxu0  ;;  %4111 = vmatmul.mubr.msk.bf16.vlgmr.msra.gmra.mrb[48].mxu0 %vm1122_vm3, %v1541_v15  ;;  %v4413_v18 = vld [vmem:[%s5492_s7 + $0x30] sm:$0xff]  }
 0x510   : > { %4121 = vmatpush3.bf16.msra.mxu0 %v1690_v17  ;;  %4122 = vmatprep.mubr.msk.bf16.mxu0 %vm4603_vm0, %v4602_v0  ;;  %v4414_v19 = vld [vmem:[%s5492_s7 + $0x38] sm:$0xff]  }
 0x511   : > { %4134 = vmatprep.subr.bf16.mxu0 %v4602_v0 }
 0x514   : > { %v1534_v20 = vpop.f32.mrb[44].mxu0 }
 0x515   : > { %v1543_v21 = vpack.c.bf16 %v1534_v20, %v1534_v20  ;;  %v4100_v22 = vpop.f32.mrb[45].mxu0  ;;  %v5098_v20 = vsub.s32 0, %v5027_v36 }
 0x516   : > { %v1537_v23 = vpop.f32.mrb[46].mxu0 }
 0x517   : > { %v4101_v24 = vpop.f32.mrb[47].mxu0  ;;  %4123 = vmatmul.mubr.msk.bf16.vlgmr.msra.gmra.mrb[52].mxu0 %vm1122_vm3, %v1543_v21  ;;  %v1777_v21 = vrot.slane %v5038_v46, %v5098_v20 }
 0x518   : > { %4150 = vmatprep.mubr.msk.bf16.mxu0 %vm4603_vm0, %v4602_v0 }
 0x5d2   : > { %v1588_v25 = vpop.f32.mrb[36].mxu1 }
 0x5d3   : > { %v4106_v26 = vpop.f32.mrb[37].mxu1  ;;  %v1732_v37 = vsel %vm590_vm1, %v1588_v25, 0.0 }
 0x5d4   : > { %v1591_v27 = vpop.f32.mrb[38].mxu1 }
 0x5d5   : > { %v4107_v28 = vpop.f32.mrb[39].mxu1 }
 0x5da   : > { %v1680_v29 = vpop.f32.mrb[40].mxu1 }
 0x5db   : > { %v4118_v30 = vpop.f32.mrb[41].mxu1  ;;  %v1735_v42 = vsel %vm590_vm1, %v1680_v29, 0.0  ;;  %v1853_v29 = vsub.s32 6, %v5027_v36 }
 0x5dc   : > { %v1683_v32 = vpop.f32.mrb[42].mxu1 }
 0x5dd   : > { %v4119_v33 = vpop.f32.mrb[43].mxu1  ;;  %v1854_v30 = vrot.slane %v5038_v46, %v1853_v29 }
 0x5e2   : > { %v1634_v35 = vpop.f32.mrb[48].mxu0 }
 0x5e3   : > { %v1733_v38 = vsel %vm590_vm1, %v1634_v35, 0.0  ;;  %v4112_v39 = vpop.f32.mrb[49].mxu0 }
 0x5e4   : > { %v1734_v40 = vadd.f32 %v1733_v38, %v1732_v37  ;;  %v1637_v41 = vpop.f32.mrb[50].mxu0 }
 0x5e5   : > { %v4113_v43 = vpop.f32.mrb[51].mxu0 }
 0x5e6   : > { %v1736_v44 = vadd.f32 %v1735_v42, %v1734_v40 }
 0x5ea   : > { %v1726_v31 = vpop.f32.mrb[52].mxu0 }
 0x5eb   : > { %v1737_v48 = vsel %vm590_vm1, %v1726_v31, 0.0  ;;  %v4124_v49 = vpop.f32.mrb[53].mxu0  ;;  %v3746_v31 = vld [vmem:[%s5488_s3 + $0x30] sm:$0xf] }
 0x5ec   : > { %v1738_v50 = vadd.f32 %v1737_v48, %v1736_v44  ;;  %v1729_v51 = vpop.f32.mrb[54].mxu0  ;;  %v2072_v48 = vsel %vm590_vm1, %v3746_v31, 0 }
 0x5ed   : > { %v4125_v52 = vpop.f32.mrb[55].mxu0 }
 0x5ee   : > { %v1743_v54 = vadd.f32 %v1742_v47, %v1738_v50  ;;  %v3750_v47 = vld [vmem:[%s5488_s3 + $0x40] sm:$0xf] }
 0x5ef   : > { %v2244_v49 = vsel %vm590_vm1, %v3750_v47, 0 }
 0x5f0   : > { %v1744_v55 = vadd.f32 %v1743_v54, %v4821_v12  ;;  %v4407_v12 = vld [vmem:[%s5492_s7] sm:$0xff]   ;;  %v1959_v54 = vsub.s32 4, %v5027_v36 }
 0x5f1   : > { %4135 = vmatpush3.bf16.msra.mxu0 %v4407_v12 }
 0x5f2   : > { %v1745_v56 = vsel %vm590_vm1, %v1744_v55, 0.0  ;;  %4136 = vmatprep.subr.bf16.mxu0 %v4602_v0 }
 0x5f3   : > { %1746 = vadd.xlane.f32.xlu0 %v1745_v56  ;;  %v1960_v56 = vrot.slane %v5038_v46, %v1959_v54 }
 0x5f5   : > { %4137 = vmatpush3.bf16.msra.mxu0 %v4408_v63 }
 0x5f6   : > { %4138 = vmatprep.subr.bf16.mxu0 %v4602_v0 }
 0x5f9   : > { %4139 = vmatpush3.bf16.msra.mxu0 %v4409_v1  ;;  %v2330_v1 = vsel %vm590_vm1, %v3752_v61, 0 }
 0x5fa   : > { %4140 = vmatprep.subr.bf16.mxu0 %v4602_v0 }
 0x5fd   : > { %4141 = vmatpush3.bf16.msra.mxu0 %v4410_v2  ;;  %v3754_v2 = vld [vmem:[%s5488_s3 + $0x50] sm:$0xf] }
 0x5fe   : > { %4142 = vmatprep.subr.bf16.mxu0 %v4602_v0 }
 0x601   : > { %4143 = vmatpush3.bf16.msra.mxu0 %v4411_v3 }
 0x602   : > { %4144 = vmatprep.subr.bf16.mxu0 %v4602_v0 }
 0x605   : > { %4145 = vmatpush3.bf16.msra.mxu0 %v4412_v4  ;;  %v2416_v4 = vsel %vm590_vm1, %v3754_v2, 0 }
 0x606   : > { %4146 = vmatprep.subr.bf16.mxu0 %v4602_v0 }
 0x609   : > { %4147 = vmatpush3.bf16.msra.mxu0 %v4413_v18  ;;  %v3757_v18 = vld [vmem:[%s5488_s3 + $0x5c] sm:$0xf] }
 0x60a   : > { %4148 = vmatprep.subr.bf16.mxu0 %v4602_v0 }
 0x60d   : > { %4149 = vmatpush3.bf16.msra.mxu0 %v4414_v19  ;;  %v2545_v19 = vsel %vm590_vm1, %v3757_v18, 0 }
 0x60e   : > { %4178 = vmatprep.subr.bf16.mxu0 %v4602_v0 }
 0x680   : > { %v1747_v53 = vpop.xlane.xlu0 %1746 }
 0x681   : > { %v1749_v57 = vmul.f32 0.03125, %v1747_v53 }
 0x683   : > { %v1750_v58 = vsub.f32 %v1744_v55, %v1749_v57  ;;  %v1964_v55 = vsub.s32 5, %v5027_v36  ;;  %v4426_v36 = vld [vmem:[%s5495_s10 + $0x8] sm:$0xff]  }
 0x685   : > { %v1751_v59 = vmul.f32 %v1750_v58, %v1750_v58  ;;  %v1965_v57 = vrot.slane %v5038_v46, %v1964_v55  ;;  %v3748_v46 = vld [vmem:[%s5488_s3 + $0x38] sm:$0xf] }
 0x686   : > { %v2158_v3 = vsel %vm590_vm1, %v3748_v46, 0 }
 0x687   : > { %v1752_v60 = vsel %vm590_vm1, %v1751_v59, 0.0 }
 0x688   : > { %1753 = vadd.xlane.f32.xlu1 %v1752_v60  ;;  %v3747_v60 = vld [vmem:[%s5488_s3 + $0x34] sm:$0xf] }
 0x689   : > { %v2115_v63 = vsel %vm590_vm1, %v3747_v60, 0 }
 0x715   : > { %v1754_v5 = vpop.xlane.xlu1 %1753 }
 0x716   : > { %v1755_v6 = vmul.f32 0.03125, %v1754_v5  ;;  %v3749_v5 = vld [vmem:[%s5488_s3 + $0x3c] sm:$0xf] }
 0x718   : > { %v1756_v7 = vadd.f32 1e-05, %v1755_v6  ;;  %v3756_v6 = vld [vmem:[%s5488_s3 + $0x58] sm:$0xf] }
 0x71a   : > { %4444 = vrsqrt.f32 %v1756_v7  ;;  %v2201_v7 = vsel %vm590_vm1, %v3749_v5, 0 }
 0x724   : > { %v4445_v11 = vpop.eup %4444 }
 0x725   : > { %v1758_v13 = vmul.f32 %v4445_v11, %v1750_v58  ;;  %v3751_v11 = vld [vmem:[%s5488_s3 + $0x44] sm:$0xf] }
 0x727   : > { %v1763_v15 = vmul.f32 %v1762_v10, %v1758_v13  ;;  %v2502_v10 = vsel %vm590_vm1, %v3756_v6, 0  ;;  %v2287_v13 = vsel %vm590_vm1, %v3751_v11, 0 }
 0x729   : > { %v1768_v16 = vadd.f32 %v1767_v14, %v1763_v15  ;;  %v3753_v14 = vld [vmem:[%s5488_s3 + $0x4c] sm:$0xf] }
 0x72a   : > { %v2373_v15 = vsel %vm590_vm1, %v3753_v14, 0 }
 0x72b   : > { %v1769_v17 = vpack.c.bf16 %v1768_v16, %v1768_v16 }
 0x72d   : > { %4131 = vmatmul.mubr.msk.bf16.vlgmr.msra.gmra.mrb[44].mxu1 %vm590_vm1, %v1769_v17 }
 0x72e   : > { %4156 = vmatprep.mubr.msk.bf16.mxu1 %vm4603_vm0, %v4602_v0  ;;  %4155 = vmatpush3.bf16.xpose.msra.mxu1 %v2072_v48 }
 0x72f   : > { %4160 = vmatprep.subr.bf16.mxu1 %v4602_v0 }
 0x800   : > { %v1827_v22 = vpop.f32.mrb[44].mxu1 }
 0x801   : > { %v1828_v23 = vadd.f32 %v1827_v22, %v1777_v21  ;;  %v4132_v24 = vpop.f32.mrb[45].mxu1  ;;  %v3774_v21 = vld [vmem:[%s5489_s4 + $0x10] ss:$0 sm:$0xff] }
 0x802   : > { %v1830_v25 = vpop.f32.mrb[46].mxu1 }
 0x803   : > { %v1833_v26 = vmax.f32 %v1828_v23, 0.0  ;;  %v4133_v27 = vpop.f32.mrb[47].mxu1 }
 0x805   : > { %v1834_v28 = vpack.c.bf16 %v1833_v26, %v1833_v26 }
 0x807   : > { %4151 = vmatmul.mubr.bf16.vlgmr.msra.gmra.mrb[56].mxu0 %v1834_v28 }
 0x808   : > { %4180 = vmatprep.mubr.msk.bf16.mxu0 %vm4603_vm0, %v4602_v0  ;;  %4179 = vmatpush3.bf16.xpose.msra.mxu0 %v2244_v49 }
 0x809   : > { %4190 = vmatprep.subr.bf16.mxu0 %v4602_v0 }
 0x8da   : > { %v1937_v32 = vpop.f32.mrb[56].mxu0 }
 0x8db   : > { %v1938_v33 = vadd.f32 %v1937_v32, %v1854_v30  ;;  %v4152_v34 = vpop.f32.mrb[57].mxu0 }
 0x8dc   : > { %v1940_v35 = vpop.f32.mrb[58].mxu0  ;;  %v3770_v34 = vld [vmem:[%s5489_s4 + $0xc] ss:$0 sm:$0xff] }
 0x8dd   : > { %v4153_v37 = vpop.f32.mrb[59].mxu0  ;;  %v1943_v38 = vadd.f32 %v1938_v33, %v1768_v16  ;;  %v3755_v16 = vld [vmem:[%s5488_s3 + $0x54] sm:$0xf] }
 0x8de   : > { %v2459_v17 = vsel %vm590_vm1, %v3755_v16, 0  ;;  %v3776_v37 = vld [vmem:[%s5489_s4 + $0x12] ss:$0 sm:$0xff]  ;;  %v3775_v16 = vld [vmem:[%s5489_s4 + $0x11] ss:$0 sm:$0xff] }
 0x8df   : > { %v1944_v39 = vsel %vm590_vm1, %v1943_v38, 0.0 }
 0x8e0   : > { %1945 = vadd.xlane.f32.xlu0 %v1944_v39 }
 0x96d   : > { %v1946_v40 = vpop.xlane.xlu0 %1945 }
 0x96e   : > { %v1947_v41 = vmul.f32 0.03125, %v1946_v40 }
 0x970   : > { %v1948_v42 = vsub.f32 %v1943_v38, %v1947_v41 }
 0x972   : > { %v1949_v43 = vmul.f32 %v1948_v42, %v1948_v42 }
 0x974   : > { %v1950_v44 = vsel %vm590_vm1, %v1949_v43, 0.0 }
 0x975   : > { %1951 = vadd.xlane.f32.xlu1 %v1950_v44 }
 0xa02   : > { %v1952_v50 = vpop.xlane.xlu1 %1951 }
 0xa03   : > { %v1953_v51 = vmul.f32 0.03125, %v1952_v50 }
 0xa05   : > { %v1954_v52 = vadd.f32 1e-05, %v1953_v51 }
 0xa07   : > { %4446 = vrsqrt.f32 %v1954_v52  ;;  %v3772_v52 = vld [vmem:[%s5489_s4 + $0xe] ss:$0 sm:$0xff] }
 0xa11   : > { %v4447_v53 = vpop.eup %4446 }
 0xa12   : > { %v1956_v58 = vmul.f32 %v4447_v53, %v1948_v42 }
 0xa14   : > { %v1961_v59 = vmul.f32 %v1960_v56, %v1956_v58  ;;  %v3778_v56 = vld [vmem:[%s5489_s4 + $0x14] ss:$0 sm:$0xff] }
 0xa16   : > { %v5134_v62 = vadd.f32 %v1965_v57, %v1961_v59 }
 0xa18   : > { %v1969_v12 = vpack.c.bf16 %v5134_v62, %v5134_v62 }
 0xa1a   : > { %4157 = vmatmul.mubr.msk.bf16.vlgmr.msra.gmra.mrb[48].mxu1 %vm590_vm1, %v1969_v12  ;;  %4181 = vmatmul.mubr.msk.bf16.vlgmr.msra.gmra.mrb[60].mxu0 %vm590_vm1, %v1969_v12 }
 0xa1b   : > { %4161 = vmatpush3.bf16.xpose.msra.mxu1 %v2115_v63  ;;  %4191 = vmatpush3.bf16.xpose.msra.mxu0 %v2330_v1 }
 0xa1c   : > { %4162 = vmatprep.mubr.msk.bf16.mxu1 %vm4603_vm0, %v4602_v0  ;;  %4192 = vmatprep.mubr.msk.bf16.mxu0 %vm4603_vm0, %v4602_v0 }
 0xa1d   : > { %4166 = vmatprep.subr.bf16.mxu1 %v4602_v0  ;;  %4202 = vmatprep.subr.bf16.mxu0 %v4602_v0 }
 0xa22   : > { %4163 = vmatmul.mubr.msk.bf16.vlgmr.msra.gmra.mrb[52].mxu1 %vm590_vm1, %v1969_v12  ;;  %4193 = vmatmul.mubr.msk.bf16.vlgmr.msra.gmra.mrb[64].mxu0 %vm590_vm1, %v1969_v12 }
 0xa23   : > { %4167 = vmatpush3.bf16.xpose.msra.mxu1 %v2158_v3  ;;  %4203 = vmatpush3.bf16.xpose.msra.mxu0 %v2416_v4 }
 0xa24   : > { %4168 = vmatprep.mubr.msk.bf16.mxu1 %vm4603_vm0, %v4602_v0  ;;  %4204 = vmatprep.mubr.msk.bf16.mxu0 %vm4603_vm0, %v4602_v0 }
 0xa25   : > { %4172 = vmatprep.subr.bf16.mxu1 %v4602_v0  ;;  %4214 = vmatprep.subr.bf16.mxu0 %v4602_v0 }
 0xa2a   : > { %4169 = vmatmul.mubr.msk.bf16.vlgmr.msra.gmra.mrb[56].mxu1 %vm590_vm1, %v1969_v12  ;;  %4205 = vmatmul.mubr.msk.bf16.vlgmr.msra.gmra.mrb[68].mxu0 %vm590_vm1, %v1969_v12 }
 0xa2b   : > { %4173 = vmatpush3.bf16.xpose.msra.mxu1 %v2201_v7  ;;  %4215 = vmatpush3.bf16.xpose.msra.mxu0 %v2502_v10 }
 0xa2c   : > { %4174 = vmatprep.mubr.msk.bf16.mxu1 %vm4603_vm0, %v4602_v0  ;;  %4216 = vmatprep.mubr.msk.bf16.mxu0 %vm4603_vm0, %v4602_v0 }
 0xa2d   : > { %4184 = vmatprep.subr.bf16.mxu1 %v4602_v0  ;;  %4226 = vmatprep.subr.bf16.mxu0 %v4602_v0 }
 0xa32   : > { %4175 = vmatmul.mubr.msk.bf16.vlgmr.msra.gmra.mrb[60].mxu1 %vm590_vm1, %v1969_v12  ;;  %4217 = vmatmul.mubr.msk.bf16.vlgmr.msra.gmra.mrb[72].mxu0 %vm590_vm1, %v1969_v12 }
 0xa33   : > { %4185 = vmatpush3.bf16.xpose.msra.mxu1 %v2287_v13  ;;  %4186 = vmatprep.mubr.msk.bf16.mxu1 %vm4603_vm0, %v4602_v0 }
 0xa34   : > { %4196 = vmatprep.subr.bf16.mxu1 %v4602_v0  ;;  %4228 = vmatprep.mubr.msk.bf16.mxu0 %vm4603_vm0, %v4602_v0 }
 0xa3a   : > { %4187 = vmatmul.mubr.msk.bf16.vlgmr.msra.gmra.mrb[64].mxu1 %vm590_vm1, %v1969_v12 }
 0xa3b   : > { %4197 = vmatpush3.bf16.xpose.msra.mxu1 %v2373_v15  ;;  %4198 = vmatprep.mubr.msk.bf16.mxu1 %vm4603_vm0, %v4602_v0 }
 0xa3c   : > { %4208 = vmatprep.subr.bf16.mxu1 %v4602_v0 }
 0xa42   : > { %4199 = vmatmul.mubr.msk.bf16.vlgmr.msra.gmra.mrb[68].mxu1 %vm590_vm1, %v1969_v12 }
 0xa43   : > { %4209 = vmatpush3.bf16.xpose.msra.mxu1 %v2459_v17  ;;  %4210 = vmatprep.mubr.msk.bf16.mxu1 %vm4603_vm0, %v4602_v0 }
 0xa44   : > { %4220 = vmatprep.subr.bf16.mxu1 %v4602_v0 }
 0xa4a   : > { %4211 = vmatmul.mubr.msk.bf16.vlgmr.msra.gmra.mrb[72].mxu1 %vm590_vm1, %v1969_v12 }
 0xa4b   : > { %4221 = vmatpush3.bf16.xpose.msra.mxu1 %v2545_v19  ;;  %4222 = vmatprep.mubr.msk.bf16.mxu1 %vm4603_vm0, %v4602_v0 }
 0xa4c   : > { %4232 = vmatprep.subr.bf16.mxu1 %v4602_v0 }
 0xa52   : > { %4223 = vmatmul.mubr.msk.bf16.vlgmr.msra.gmra.mrb[76].mxu1 %vm590_vm1, %v1969_v12 }
 0xa53   : > { %4234 = vmatprep.mubr.msk.bf16.mxu1 %vm4603_vm0, %v4602_v0 }
 0xaed   : > { %v2108_v22 = vpop.f32.mrb[48].mxu1  ;;  %v2280_v23 = vpop.f32.mrb[60].mxu0 }
 0xaee   : > { %v2281_v24 = vadd.f32 %v3774_v21, %v2280_v23  ;;  %v4158_v25 = vpop.f32.mrb[49].mxu1  ;;  %v4182_v26 = vpop.f32.mrb[61].mxu0  ;;  %v2109_v38 = vadd.f32 %v3770_v34, %v2108_v22 }
 0xaef   : > { %v2111_v27 = vpop.f32.mrb[50].mxu1  ;;  %v2283_v28 = vpop.f32.mrb[62].mxu0  ;;  %v3777_v26 = vld [vmem:[%s5489_s4 + $0x13] ss:$0 sm:$0xff] }
 0xaf0   : > { %v2591_v30 = vpack.c.bf16 %v2281_v24, %v2281_v24  ;;  %v4159_v32 = vpop.f32.mrb[51].mxu1  ;;  %v4183_v33 = vpop.f32.mrb[63].mxu0  ;;  %v2587_v47 = vpack.c.bf16 %v2109_v38, %v2109_v38  ;;  %v3771_v24 = vld [vmem:[%s5489_s4 + $0xd] ss:$0 sm:$0xff]  ;;  %v3773_v38 = vld [vmem:[%s5489_s4 + $0xf] ss:$0 sm:$0xff] }
 0xaf2   : > { %v2603_v35 = vsel %vm1122_vm3, %v2591_v30, 0 }
 0xaf3   : > { %4227 = vmatpush3.bf16.xpose.msra.mxu0 %v2603_v35 }
 0xaf4   : > { %4238 = vmatprep.subr.bf16.mxu0 %v4602_v0 }
 0xaf5   : > { %v2151_v39 = vpop.f32.mrb[52].mxu1  ;;  %v2366_v40 = vpop.f32.mrb[64].mxu0 }
 0xaf6   : > { %v2367_v41 = vadd.f32 %v3776_v37, %v2366_v40  ;;  %v4164_v42 = vpop.f32.mrb[53].mxu1  ;;  %v4194_v43 = vpop.f32.mrb[65].mxu0  ;;  %v2152_v27 = vadd.f32 %v3771_v24, %v2151_v39  ;;  %v3779_v39 = vld [vmem:[%s5489_s4 + $0x15] ss:$0 sm:$0xff] }
 0xaf7   : > { %v2154_v44 = vpop.f32.mrb[54].mxu1  ;;  %v2369_v31 = vpop.f32.mrb[66].mxu0 }
 0xaf8   : > { %v2593_v48 = vpack.c.bf16 %v2367_v41, %v2367_v41  ;;  %v4165_v49 = vpop.f32.mrb[55].mxu1  ;;  %v4195_v50 = vpop.f32.mrb[67].mxu0  ;;  %v2588_v34 = vpack.c.bf16 %v2152_v27, %v2152_v27 }
 0xafa   : > { %v2695_v51 = vsel %vm1122_vm3, %v2593_v48, 0  ;;  %4229 = vmatmul.mubr.msk.bf16.vlgmr.msra.gmra.mrb[76].mxu0 %vm1122_vm3, %v2587_v47 }
 0xafb   : > { %4239 = vmatpush3.bf16.xpose.msra.mxu0 %v2695_v51  ;;  %4240 = vmatprep.mubr.msk.bf16.mxu0 %vm4603_vm0, %v4602_v0 }
 0xafc   : > { %4250 = vmatprep.subr.bf16.mxu0 %v4602_v0 }
 0xafd   : > { %v2194_v53 = vpop.f32.mrb[56].mxu1  ;;  %v2452_v57 = vpop.f32.mrb[68].mxu0 }
 0xafe   : > { %v2195_v58 = vadd.f32 %v3772_v52, %v2194_v53  ;;  %v2453_v59 = vadd.f32 %v3778_v56, %v2452_v57  ;;  %v4170_v60 = vpop.f32.mrb[57].mxu1  ;;  %v4206_v61 = vpop.f32.mrb[69].mxu0 }
 0xaff   : > { %v2197_v12 = vpop.f32.mrb[58].mxu1  ;;  %v2455_v63 = vpop.f32.mrb[70].mxu0 }
 0xb00   : > { %v2589_v1 = vpack.c.bf16 %v2195_v58, %v2195_v58  ;;  %v2595_v46 = vpack.c.bf16 %v2453_v59, %v2453_v59  ;;  %v4171_v2 = vpop.f32.mrb[59].mxu1  ;;  %v4207_v3 = vpop.f32.mrb[71].mxu0 }
 0xb02   : > { %v2835_v4 = vsel %vm1358_vm4, %v2595_v46, 0  ;;  %4241 = vmatmul.mubr.msk.bf16.vlgmr.msra.gmra.mrb[80].mxu0 %vm1122_vm3, %v2589_v1 }
 0xb03   : > { %4251 = vmatpush3.bf16.msra.mxu0 %v2835_v4  ;;  %4252 = vmatprep.mubr.msk.bf16.mxu0 %vm4603_vm0, %v4602_v0 }
 0xb04   : > { %4262 = vmatprep.subr.bf16.mxu0 %v4602_v0 }
 0xb05   : > { %v2237_v5 = vpop.f32.mrb[60].mxu1  ;;  %v5245_v6 = vpop.f32.mrb[72].mxu0 }
 0xb06   : > { %v4176_v7 = vpop.f32.mrb[61].mxu1  ;;  %v4218_v10 = vpop.f32.mrb[73].mxu0  ;;  %v2238_v41 = vadd.f32 %v3773_v38, %v2237_v5 }
 0xb07   : > { %v2240_v11 = vpop.f32.mrb[62].mxu1  ;;  %v2541_v13 = vpop.f32.mrb[74].mxu0 }
 0xb08   : > { %v4177_v14 = vpop.f32.mrb[63].mxu1  ;;  %v4219_v15 = vpop.f32.mrb[75].mxu0  ;;  %v2590_v47 = vpack.c.bf16 %v2238_v41, %v2238_v41 }
 0xb0d   : > { %v2323_v17 = vpop.f32.mrb[64].mxu1 }
 0xb0e   : > { %v2324_v18 = vadd.f32 %v3775_v16, %v2323_v17  ;;  %v4188_v19 = vpop.f32.mrb[65].mxu1 }
 0xb0f   : > { %v2326_v21 = vpop.f32.mrb[66].mxu1 }
 0xb10   : > { %v2592_v22 = vpack.c.bf16 %v2324_v18, %v2324_v18  ;;  %v4189_v23 = vpop.f32.mrb[67].mxu1 }
 0xb12   : > { %v2649_v25 = vsel %vm1122_vm3, %v2592_v22, 0 }
 0xb13   : > { %4233 = vmatpush3.bf16.xpose.msra.mxu1 %v2649_v25 }
 0xb14   : > { %4244 = vmatprep.subr.bf16.mxu1 %v4602_v0 }
 0xb15   : > { %v2409_v28 = vpop.f32.mrb[68].mxu1 }
 0xb16   : > { %v2410_v30 = vadd.f32 %v3777_v26, %v2409_v28  ;;  %v4200_v32 = vpop.f32.mrb[69].mxu1 }
 0xb17   : > { %v2412_v33 = vpop.f32.mrb[70].mxu1 }
 0xb18   : > { %v2594_v35 = vpack.c.bf16 %v2410_v30, %v2410_v30  ;;  %v4201_v37 = vpop.f32.mrb[71].mxu1 }
 0xb1a   : > { %v2741_v40 = vsel %vm1122_vm3, %v2594_v35, 0  ;;  %4235 = vmatmul.mubr.msk.bf16.vlgmr.msra.gmra.mrb[80].mxu1 %vm1122_vm3, %v2588_v34 }
 0xb1b   : > { %4245 = vmatpush3.bf16.xpose.msra.mxu1 %v2741_v40  ;;  %4246 = vmatprep.mubr.msk.bf16.mxu1 %vm4603_vm0, %v4602_v0 }
 0xb1c   : > { %4256 = vmatprep.subr.bf16.mxu1 %v4602_v0 }
 0xb1d   : > { %v2495_v42 = vpop.f32.mrb[72].mxu1 }
 0xb1e   : > { %v2496_v43 = vadd.f32 %v3779_v39, %v2495_v42  ;;  %v4212_v44 = vpop.f32.mrb[73].mxu1  ;;  %v3780_v42 = vld [vmem:[%s5489_s4 + $0x16] ss:$0 sm:$0xff] }
 0xb1f   : > { %v2498_v31 = vpop.f32.mrb[74].mxu1 }
 0xb20   : > { %v2596_v48 = vpack.c.bf16 %v2496_v43, %v2496_v43  ;;  %v4213_v49 = vpop.f32.mrb[75].mxu1  ;;  %v2539_v43 = vadd.f32 %v3780_v42, %v5245_v6 }
 0xb22   : > { %v2881_v50 = vsel %vm1358_vm4, %v2596_v48, 0  ;;  %4247 = vmatmul.mubr.msk.bf16.vlgmr.msra.gmra.mrb[84].mxu1 %vm1122_vm3, %v2590_v47  ;;  %v2597_v47 = vpack.c.bf16 %v2539_v43, %v2539_v43 }
 0xb23   : > { %4257 = vmatpush3.bf16.msra.mxu1 %v2881_v50  ;;  %4258 = vmatprep.mubr.msk.bf16.mxu1 %vm4603_vm0, %v4602_v0 }
 0xb24   : > { %4268 = vmatprep.subr.bf16.mxu1 %v4602_v0  ;;  %v2927_v50 = vsel %vm1358_vm4, %v2597_v47, 0 }
 0xb25   : > { %v5274_v51 = vpop.f32.mrb[76].mxu1 }
 0xb26   : > { %v4224_v52 = vpop.f32.mrb[77].mxu1 }
 0xb27   : > { %v2584_v56 = vpop.f32.mrb[78].mxu1 }
 0xb28   : > { %v4225_v53 = vpop.f32.mrb[79].mxu1 }
 0xbcd   : > { %v2639_v57 = vpop.f32.mrb[76].mxu0 }
 0xbce   : > { %v4230_v58 = vpop.f32.mrb[77].mxu0  ;;  %v2783_v59 = vsel %vm1122_vm3, %v2639_v57, -inf }
 0xbcf   : > { %2784 = vmax.xlane.f32.xlu0 %v2783_v59  ;;  %v2642_v60 = vpop.f32.mrb[78].mxu0 }
 0xbd0   : > { %v4231_v61 = vpop.f32.mrb[79].mxu0 }
 0xbd5   : > { %v2731_v12 = vpop.f32.mrb[80].mxu0 }
 0xbd6   : > { %v4242_v63 = vpop.f32.mrb[81].mxu0  ;;  %v2789_v1 = vsel %vm1122_vm3, %v2731_v12, -inf }
 0xbd7   : > { %2790 = vmax.xlane.f32.xlu0 %v2789_v1  ;;  %v2734_v46 = vpop.f32.mrb[82].mxu0 }
 0xbd8   : > { %v4243_v2 = vpop.f32.mrb[83].mxu0 }
 0xbed   : > { %v2685_v3 = vpop.f32.mrb[80].mxu1 }
 0xbee   : > { %v4236_v4 = vpop.f32.mrb[81].mxu1  ;;  %v2786_v5 = vsel %vm1122_vm3, %v2685_v3, -inf }
 0xbef   : > { %2787 = vmax.xlane.f32.xlu1 %v2786_v5  ;;  %v2688_v7 = vpop.f32.mrb[82].mxu1  ;;  %v3803_v5 = vld [vmem:[%s5490_s5 + $0x14] sm:$0xf] }
 0xbf0   : > { %v4237_v10 = vpop.f32.mrb[83].mxu1  ;;  %v3074_v7 = vsel %vm1358_vm4, %v3803_v5, 0 }
 0xbf1   : > { %v3804_v10 = vld [vmem:[%s5490_s5 + $0x18] sm:$0xf] }
 0xbf5   : > { %v2777_v11 = vpop.f32.mrb[84].mxu1 }
 0xbf6   : > { %v4248_v13 = vpop.f32.mrb[85].mxu1  ;;  %v2792_v14 = vsel %vm1122_vm3, %v2777_v11, -inf }
 0xbf7   : > { %2793 = vmax.xlane.f32.xlu1 %v2792_v14  ;;  %v2780_v15 = vpop.f32.mrb[86].mxu1 }
 0xbf8   : > { %v4249_v16 = vpop.f32.mrb[87].mxu1  ;;  %v3120_v15 = vsel %vm1358_vm4, %v3804_v10, 0 }
 0xc5c   : > { %v2785_v17 = vpop.xlane.xlu0 %2784 }
 0xc5d   : > { %v2795_v18 = vsub.f32 %v2639_v57, %v2785_v17  ;;  %v3781_v57 = vld [vmem:[%s5489_s4 + $0x17] ss:$0 sm:$0xff] }
 0xc5e   : > { %v2582_v58 = vadd.f32 %v3781_v57, %v5274_v51  ;;  %v3802_v51 = vld [vmem:[%s5490_s5 + $0x10] sm:$0xf] }
 0xc5f   : > { %v2799_v19 = vmul.f32 1.442695, %v2795_v18  ;;  %v3028_v4 = vsel %vm1358_vm4, %v3802_v51, 0 }
 0xc60   : > { %v2598_v61 = vpack.c.bf16 %v2582_v58, %v2582_v58 }
 0xc61   : > { %4448 = vpow2.f32 %v2799_v19 }
 0xc62   : > { %v2973_v1 = vsel %vm1358_vm4, %v2598_v61, 0 }
 0xc64   : > { %v2791_v21 = vpop.xlane.xlu0 %2790 }
 0xc65   : > { %v2797_v22 = vsub.f32 %v2731_v12, %v2791_v21 }
 0xc67   : > { %v2803_v23 = vmul.f32 1.442695, %v2797_v22 }
 0xc69   : > { %4450 = vpow2.f32 %v2803_v23 }
 0xc6b   : > { %v4449_v24 = vpop.eup %4448 }
 0xc6c   : > { %v2807_v25 = vsel %vm1122_vm3, %v4449_v24, 0.0 }
 0xc6d   : > { %2808 = vadd.xlane.f32.xlu0 %v2807_v25 }
 0xc73   : > { %v4451_v26 = vpop.eup %4450 }
 0xc74   : > { %v2813_v27 = vsel %vm1122_vm3, %v4451_v26, 0.0 }
 0xc75   : > { %2814 = vadd.xlane.f32.xlu0 %v2813_v27 }
 0xc7c   : > { %v2788_v28 = vpop.xlane.xlu1 %2787 }
 0xc7d   : > { %v2796_v30 = vsub.f32 %v2685_v3, %v2788_v28 }
 0xc7f   : > { %v2801_v32 = vmul.f32 1.442695, %v2796_v30 }
 0xc81   : > { %4452 = vpow2.f32 %v2801_v32 }
 0xc84   : > { %v2794_v33 = vpop.xlane.xlu1 %2793 }
 0xc85   : > { %v2798_v34 = vsub.f32 %v2777_v11, %v2794_v33 }
 0xc87   : > { %v2805_v35 = vmul.f32 1.442695, %v2798_v34 }
 0xc89   : > { %4454 = vpow2.f32 %v2805_v35 }
 0xc8b   : > { %v4453_v37 = vpop.eup %4452 }
 0xc8c   : > { %v2810_v38 = vsel %vm1122_vm3, %v4453_v37, 0.0 }
 0xc8d   : > { %2811 = vadd.xlane.f32.xlu1 %v2810_v38 }
 0xc93   : > { %v4455_v40 = vpop.eup %4454 }
 0xc94   : > { %v2816_v39 = vsel %vm1122_vm3, %v4455_v40, 0.0 }
 0xc95   : > { %2817 = vadd.xlane.f32.xlu1 %v2816_v39 }
 0xcfa   : > { %v2809_v41 = vpop.xlane.xlu0 %2808 }
 0xcfb   : > { %4456 = vrcp.f32 %v2809_v41 }
 0xd02   : > { %v2815_v44 = vpop.xlane.xlu0 %2814 }
 0xd03   : > { %4458 = vrcp.f32 %v2815_v44 }
 0xd05   : > { %v4457_v31 = vpop.eup %4456 }
 0xd06   : > { %v2823_v48 = vmul.f32 %v4457_v31, %v4449_v24  ;;  %v3805_v24 = vld [vmem:[%s5490_s5 + $0x1c] sm:$0xf] }
 0xd07   : > { %v3166_v28 = vsel %vm1358_vm4, %v3805_v24, 0 }
 0xd08   : > { %v2827_v49 = vpack.c.bf16 %v2823_v48, %v2823_v48 }
 0xd0a   : > { %4253 = vmatmul.mubr.msk.bf16.vlgmr.msra.gmra.mrb[84].mxu0 %vm1122_vm3, %v2827_v49 }
 0xd0b   : > { %4263 = vmatpush3.bf16.msra.mxu0 %v2927_v50  ;;  %4264 = vmatprep.mubr.msk.bf16.mxu0 %vm4603_vm0, %v4602_v0 }
 0xd0c   : > { %4274 = vmatprep.subr.bf16.mxu0 %v4602_v0 }
 0xd0d   : > { %v4459_v52 = vpop.eup %4458 }
 0xd0e   : > { %v2825_v56 = vmul.f32 %v4459_v52, %v4451_v26 }
 0xd10   : > { %v2829_v53 = vpack.c.bf16 %v2825_v56, %v2825_v56 }
 0xd12   : > { %4265 = vmatmul.mubr.msk.bf16.vlgmr.msra.gmra.mrb[88].mxu0 %vm1122_vm3, %v2829_v53 }
 0xd13   : > { %4276 = vmatprep.mubr.msk.bf16.mxu0 %vm4603_vm0, %v4602_v0  ;;  %4275 = vmatpush3.bf16.msra.mxu0 %v3028_v4 }
 0xd14   : > { %4286 = vmatprep.subr.bf16.mxu0 %v4602_v0 }
 0xd1a   : > { %v2812_v6 = vpop.xlane.xlu1 %2811 }
 0xd1b   : > { %4460 = vrcp.f32 %v2812_v6 }
 0xd22   : > { %v2818_v59 = vpop.xlane.xlu1 %2817 }
 0xd23   : > { %4462 = vrcp.f32 %v2818_v59  ;;  %v5346_v59 = vld [vmem:[%s5493_s8 + $0x8] sm:$0xff] }
 0xd24   : > { %v3218_v61 = vrot.slane %v5346_v59, %v5033_v45 }
 0xd25   : > { %v4461_v60 = vpop.eup %4460 }
 0xd26   : > { %v2824_v12 = vmul.f32 %v4461_v60, %v4453_v37 }
 0xd28   : > { %v2828_v63 = vpack.c.bf16 %v2824_v12, %v2824_v12 }
 0xd2a   : > { %4259 = vmatmul.mubr.msk.bf16.vlgmr.msra.gmra.mrb[88].mxu1 %vm1122_vm3, %v2828_v63 }
 0xd2b   : > { %4269 = vmatpush3.bf16.msra.mxu1 %v2973_v1  ;;  %4270 = vmatprep.mubr.msk.bf16.mxu1 %vm4603_vm0, %v4602_v0 }
 0xd2c   : > { %4280 = vmatprep.subr.bf16.mxu1 %v4602_v0 }
 0xd2d   : > { %v4463_v46 = vpop.eup %4462 }
 0xd2e   : > { %v2826_v2 = vmul.f32 %v4463_v46, %v4455_v40 }
 0xd30   : > { %v2830_v3 = vpack.c.bf16 %v2826_v2, %v2826_v2 }
 0xd32   : > { %4271 = vmatmul.mubr.msk.bf16.vlgmr.msra.gmra.mrb[92].mxu1 %vm1122_vm3, %v2830_v3 }
 0xd33   : > { %4282 = vmatprep.mubr.msk.bf16.mxu1 %vm4603_vm0, %v4602_v0  ;;  %4281 = vmatpush3.bf16.msra.mxu1 %v3074_v7 }
 0xd34   : > { %4292 = vmatprep.subr.bf16.mxu1 %v4602_v0 }
 0xddd   : > { %v2871_v11 = vpop.f32.mrb[84].mxu0 }
 0xdde   : > { %v3015_v13 = vpack.c.bf16 %v2871_v11, %v2871_v11  ;;  %v4254_v14 = vpop.f32.mrb[85].mxu0 }
 0xddf   : > { %v2874_v16 = vpop.f32.mrb[86].mxu0  ;;  %v4415_v14 = vld [vmem:[%s5491_s6 + $0x10] sm:$0xff]  }
 0xde0   : > { %v4255_v17 = vpop.f32.mrb[87].mxu0  ;;  %4277 = vmatmul.mubr.msk.bf16.vlgmr.msra.gmra.mrb[92].mxu0 %vm1122_vm3, %v3015_v13  ;;  %v4418_v16 = vld [vmem:[%s5492_s7 + $0x48] sm:$0xff]  }
 0xde1   : > { %4287 = vmatpush3.bf16.msra.mxu0 %v3120_v15  ;;  %4288 = vmatprep.mubr.msk.bf16.mxu0 %vm4603_vm0, %v4602_v0  ;;  %v4416_v15 = vld [vmem:[%s5491_s6 + $0x18] sm:$0xff]   ;;  %v4419_v17 = vld [vmem:[%s5492_s7 + $0x50] sm:$0xff]  }
 0xde2   : > { %4298 = vmatprep.subr.bf16.mxu0 %v4602_v0 }
 0xde5   : > { %v2963_v18 = vpop.f32.mrb[88].mxu0 }
 0xde6   : > { %v3017_v19 = vpack.c.bf16 %v2963_v18, %v2963_v18  ;;  %v4266_v21 = vpop.f32.mrb[89].mxu0  ;;  %v4420_v18 = vld [vmem:[%s5492_s7 + $0x58] sm:$0xff]  }
 0xde7   : > { %v2966_v22 = vpop.f32.mrb[90].mxu0  ;;  %v4422_v21 = vld [vmem:[%s5492_s7 + $0x68] sm:$0xff]  }
 0xde8   : > { %v4267_v23 = vpop.f32.mrb[91].mxu0  ;;  %4289 = vmatmul.mubr.msk.bf16.vlgmr.msra.gmra.mrb[96].mxu0 %vm1122_vm3, %v3017_v19  ;;  %v4421_v19 = vld [vmem:[%s5492_s7 + $0x60] sm:$0xff]  }
 0xde9   : > { %4302 = vmatprep.mubr.msk.bf16.mxu0 %vm4603_vm0, %v4602_v0  ;;  %4299 = vmatpush3.bf16.msra.mxu0 %v4415_v14  ;;  %v3444_v14 = vld [vmem:[%s5494_s9] sm:$0xff] }
 0xdea   : > { %4300 = vmatprep.subr.bf16.mxu0 %v4602_v0 }
 0xded   : > { %4301 = vmatpush3.bf16.msra.mxu0 %v4416_v15  ;;  %v3461_v15 = vrot.slane %v3444_v14, %v5098_v20 }
 0xdee   : > { %4326 = vmatprep.subr.bf16.mxu0 %v4602_v0 }
 0xdfd   : > { %v2917_v25 = vpop.f32.mrb[88].mxu1 }
 0xdfe   : > { %v3016_v26 = vpack.c.bf16 %v2917_v25, %v2917_v25  ;;  %v4260_v27 = vpop.f32.mrb[89].mxu1  ;;  %v3237_v25 = vrot.slane %v5346_v59, %v1761_v8  ;;  %v4424_v8 = vld [vmem:[%s5492_s7 + $0x78] sm:$0xff]  }
 0xdff   : > { %v2920_v30 = vpop.f32.mrb[90].mxu1 }
 0xe00   : > { %v4261_v32 = vpop.f32.mrb[91].mxu1  ;;  %4283 = vmatmul.mubr.msk.bf16.vlgmr.msra.gmra.mrb[96].mxu1 %vm1122_vm3, %v3016_v26 }
 0xe01   : > { %4293 = vmatpush3.bf16.msra.mxu1 %v3166_v28  ;;  %4294 = vmatprep.mubr.msk.bf16.mxu1 %vm4603_vm0, %v4602_v0  ;;  %v3242_v28 = vrot.slane %v5346_v59, %v1766_v9  ;;  %v3253_v9 = vrot.slane %v5346_v59, %v5098_v20  ;;  %v3495_v20 = vrot.slane %v3444_v14, 2 }
 0xe02   : > { %4306 = vmatprep.subr.bf16.mxu1 %v4602_v0 }
 0xe05   : > { %v3009_v33 = vpop.f32.mrb[92].mxu1 }
 0xe06   : > { %v3018_v34 = vpack.c.bf16 %v3009_v33, %v3009_v33  ;;  %v4272_v35 = vpop.f32.mrb[93].mxu1 }
 0xe07   : > { %v3012_v37 = vpop.f32.mrb[94].mxu1 }
 0xe08   : > { %v4273_v38 = vpop.f32.mrb[95].mxu1  ;;  %4295 = vmatmul.mubr.msk.bf16.vlgmr.msra.gmra.mrb[100].mxu1 %vm1122_vm3, %v3018_v34  ;;  %v4423_v34 = vld [vmem:[%s5492_s7 + $0x70] sm:$0xff]  }
 0xe09   : > { %4322 = vmatprep.mubr.msk.bf16.mxu1 %vm4603_vm0, %v4602_v0 }
 0xeb3   : > { %v3064_v40 = vpop.f32.mrb[92].mxu0 }
 0xeb4   : > { %v4278_v39 = vpop.f32.mrb[93].mxu0  ;;  %v3208_v49 = vsel %vm590_vm1, %v3064_v40, 0.0 }
 0xeb5   : > { %v3067_v41 = vpop.f32.mrb[94].mxu0 }
 0xeb6   : > { %v4279_v42 = vpop.f32.mrb[95].mxu0 }
 0xebb   : > { %v3156_v43 = vpop.f32.mrb[96].mxu0 }
 0xebc   : > { %v4290_v44 = vpop.f32.mrb[97].mxu0  ;;  %v3211_v6 = vsel %vm590_vm1, %v3156_v43, 0.0  ;;  %v3331_v43 = vrot.slane %v5346_v59, %v1853_v29  ;;  %v3437_v29 = vrot.slane %v5346_v59, %v1959_v54  ;;  %v4425_v54 = vld [vmem:[%s5495_s10] sm:$0xff]  }
 0xebd   : > { %v3159_v31 = vpop.f32.mrb[98].mxu0 }
 0xebe   : > { %v4291_v47 = vpop.f32.mrb[99].mxu0 }
 0xed3   : > { %v3110_v48 = vpop.f32.mrb[96].mxu1 }
 0xed4   : > { %v3209_v50 = vsel %vm590_vm1, %v3110_v48, 0.0  ;;  %v4284_v52 = vpop.f32.mrb[97].mxu1 }
 0xed5   : > { %v3210_v56 = vadd.f32 %v3209_v50, %v3208_v49  ;;  %v3113_v53 = vpop.f32.mrb[98].mxu1 }
 0xed6   : > { %v4285_v57 = vpop.f32.mrb[99].mxu1 }
 0xed7   : > { %v3212_v58 = vadd.f32 %v3211_v6, %v3210_v56 }
 0xedb   : > { %v3202_v60 = vpop.f32.mrb[100].mxu1 }
 0xedc   : > { %v3213_v12 = vsel %vm590_vm1, %v3202_v60, 0.0  ;;  %v4296_v63 = vpop.f32.mrb[101].mxu1 }
 0xedd   : > { %v3214_v1 = vadd.f32 %v3213_v12, %v3212_v58  ;;  %v3205_v46 = vpop.f32.mrb[102].mxu1 }
 0xede   : > { %v4297_v2 = vpop.f32.mrb[103].mxu1  ;;  %v3442_v46 = vrot.slane %v5346_v59, %v1964_v55 }
 0xedf   : > { %v3219_v3 = vadd.f32 %v3218_v61, %v3214_v1 }
 0xee1   : > { %v3220_v51 = vadd.f32 %v3219_v3, %v5134_v62  ;;  %v4417_v62 = vld [vmem:[%s5492_s7 + $0x40] sm:$0xff]  }
 0xee2   : > { %4307 = vmatpush3.bf16.msra.mxu1 %v4417_v62 }
 0xee3   : > { %v3221_v4 = vsel %vm590_vm1, %v3220_v51, 0.0  ;;  %4308 = vmatprep.subr.bf16.mxu1 %v4602_v0 }
 0xee4   : > { %3222 = vadd.xlane.f32.xlu0 %v3221_v4 }
 0xee6   : > { %4309 = vmatpush3.bf16.msra.mxu1 %v4418_v16  ;;  %v3466_v16 = vrot.slane %v3444_v14, %v5033_v45  ;;  %v4427_v45 = vld [vmem:[%s5496_s11] sm:$0xff]  }
 0xee7   : > { %4310 = vmatprep.subr.bf16.mxu1 %v4602_v0 }
 0xeea   : > { %4311 = vmatpush3.bf16.msra.mxu1 %v4419_v17 }
 0xeeb   : > { %4312 = vmatprep.subr.bf16.mxu1 %v4602_v0 }
 0xeee   : > { %4313 = vmatpush3.bf16.msra.mxu1 %v4420_v18 }
 0xeef   : > { %4314 = vmatprep.subr.bf16.mxu1 %v4602_v0 }
 0xef2   : > { %4315 = vmatpush3.bf16.msra.mxu1 %v4421_v19 }
 0xef3   : > { %4316 = vmatprep.subr.bf16.mxu1 %v4602_v0 }
 0xef6   : > { %4317 = vmatpush3.bf16.msra.mxu1 %v4422_v21 }
 0xef7   : > { %4318 = vmatprep.subr.bf16.mxu1 %v4602_v0 }
 0xefa   : > { %4319 = vmatpush3.bf16.msra.mxu1 %v4423_v34 }
 0xefb   : > { %4320 = vmatprep.subr.bf16.mxu1 %v4602_v0 }
 0xefe   : > { %4321 = vmatpush3.bf16.msra.mxu1 %v4424_v8 }
 0xf71   : > { %v3223_v5 = vpop.xlane.xlu0 %3222 }
 0xf72   : > { %v3224_v7 = vmul.f32 0.03125, %v3223_v5 }
 0xf74   : > { %v3225_v10 = vsub.f32 %v3220_v51, %v3224_v7 }
 0xf76   : > { %v3226_v11 = vmul.f32 %v3225_v10, %v3225_v10 }
 0xf78   : > { %v3227_v13 = vsel %vm590_vm1, %v3226_v11, 0.0 }
 0xf79   : > { %3228 = vadd.xlane.f32.xlu1 %v3227_v13 }
0x1006   : > { %v3229_v22 = vpop.xlane.xlu1 %3228 }
0x1007   : > { %v3230_v23 = vmul.f32 0.03125, %v3229_v22 }
0x1009   : > { %v3231_v24 = vadd.f32 1e-05, %v3230_v23 }
0x100b   : > { %4464 = vrsqrt.f32 %v3231_v24 }
0x1015   : > { %v4465_v26 = vpop.eup %4464 }
0x1016   : > { %v3233_v27 = vmul.f32 %v4465_v26, %v3225_v10 }
0x1018   : > { %v3238_v30 = vmul.f32 %v3237_v25, %v3233_v27 }
0x101a   : > { %v3243_v32 = vadd.f32 %v3242_v28, %v3238_v30 }
0x101c   : > { %v3244_v33 = vpack.c.bf16 %v3243_v32, %v3243_v32 }
0x101e   : > { %4303 = vmatmul.mubr.msk.bf16.vlgmr.msra.gmra.mrb[100].mxu0 %vm590_vm1, %v3244_v33 }
0x101f   : > { %4330 = vmatprep.mubr.msk.bf16.mxu0 %vm4603_vm0, %v4602_v0  ;;  %4327 = vmatpush3.bf16.msra.mxu0 %v4425_v54 }
0x1020   : > { %4328 = vmatprep.subr.bf16.mxu0 %v4602_v0 }
0x1023   : > { %4329 = vmatpush3.bf16.msra.mxu0 %v4426_v36 }
0x1024   : > { %4334 = vmatprep.subr.bf16.mxu0 %v4602_v0 }
0x10f1   : > { %v3303_v35 = vpop.f32.mrb[100].mxu0 }
0x10f2   : > { %v3304_v37 = vadd.f32 %v3303_v35, %v3253_v9  ;;  %v4304_v38 = vpop.f32.mrb[101].mxu0 }
0x10f3   : > { %v3306_v40 = vpop.f32.mrb[102].mxu0  ;;  %v3550_v38 = vrot.slane %v3444_v14, 3 }
0x10f4   : > { %v3309_v39 = vmax.f32 %v3304_v37, 0.0  ;;  %v4305_v41 = vpop.f32.mrb[103].mxu0 }
0x10f6   : > { %v3310_v42 = vpack.c.bf16 %v3309_v39, %v3309_v39 }
0x10f8   : > { %4323 = vmatmul.mubr.bf16.vlgmr.msra.gmra.mrb[104].mxu1 %v3310_v42 }
0x11cb   : > { %v3414_v44 = vpop.f32.mrb[104].mxu1 }
0x11cc   : > { %v3415_v31 = vadd.f32 %v3414_v44, %v3331_v43  ;;  %v4324_v47 = vpop.f32.mrb[105].mxu1 }
0x11cd   : > { %v3417_v48 = vpop.f32.mrb[106].mxu1 }
0x11ce   : > { %v4325_v49 = vpop.f32.mrb[107].mxu1  ;;  %v3420_v50 = vadd.f32 %v3415_v31, %v3243_v32 }
0x11d0   : > { %v3421_v52 = vsel %vm590_vm1, %v3420_v50, 0.0 }
0x11d1   : > { %3422 = vadd.xlane.f32.xlu0 %v3421_v52 }
0x125e   : > { %v3423_v56 = vpop.xlane.xlu0 %3422 }
0x125f   : > { %v3424_v53 = vmul.f32 0.03125, %v3423_v56 }
0x1261   : > { %v3425_v6 = vsub.f32 %v3420_v50, %v3424_v53 }
0x1263   : > { %v3426_v57 = vmul.f32 %v3425_v6, %v3425_v6 }
0x1265   : > { %v3427_v58 = vsel %vm590_vm1, %v3426_v57, 0.0 }
0x1266   : > { %3428 = vadd.xlane.f32.xlu1 %v3427_v58 }
0x12f3   : > { %v3429_v60 = vpop.xlane.xlu1 %3428 }
0x12f4   : > { %v3430_v61 = vmul.f32 0.03125, %v3429_v60 }
0x12f6   : > { %v3431_v12 = vadd.f32 1e-05, %v3430_v61 }
0x12f8   : > { %4466 = vrsqrt.f32 %v3431_v12 }
0x1302   : > { %v4467_v63 = vpop.eup %4466 }
0x1303   : > { %v3433_v1 = vmul.f32 %v4467_v63, %v3425_v6 }
0x1305   : > { %v3438_v2 = vmul.f32 %v3437_v29, %v3433_v1 }
0x1307   : > { %v3443_v3 = vadd.f32 %v3442_v46, %v3438_v2 }
0x1309   : > { %v3445_v51 = vsel %vm590_vm1, %v3443_v3, 0.0 }
0x130a   : > { %3446 = vadd.xlane.f32.xlu0 %v3445_v51 }
0x1397   : > { %v3447_v4 = vpop.xlane.xlu0 %3446 }
0x1398   : > { %v3448_v5 = vmul.f32 0.03125, %v3447_v4 }
0x139a   : > { %v3449_v7 = vsub.f32 %v3443_v3, %v3448_v5 }
0x139c   : > { %v3450_v10 = vmul.f32 %v3449_v7, %v3449_v7 }
0x139e   : > { %v3451_v11 = vsel %vm590_vm1, %v3450_v10, 0.0 }
0x139f   : > { %3452 = vadd.xlane.f32.xlu1 %v3451_v11 }
0x142c   : > { %v3453_v55 = vpop.xlane.xlu1 %3452 }
0x142d   : > { %v3454_v59 = vmul.f32 0.03125, %v3453_v55 }
0x142f   : > { %v3455_v13 = vadd.f32 1e-05, %v3454_v59 }
0x1431   : > { %4468 = vrsqrt.f32 %v3455_v13 }
0x143b   : > { %v4469_v62 = vpop.eup %4468 }
0x143c   : > { %v3457_v17 = vmul.f32 %v4469_v62, %v3449_v7 }
0x143e   : > { %v3462_v18 = vmul.f32 %v3461_v15, %v3457_v17 }
0x1440   : > { %v3467_v19 = vadd.f32 %v3466_v16, %v3462_v18 }
0x1442   : > { %v3468_v21 = vsel %vm590_vm1, %v3467_v19, 0.0 }
0x1443   : > { %v3469_v22 = vrot.slane %v3468_v21, 4 }
0x1445   : > { %v3470_v23 = vadd.f32 %v3469_v22, %v3468_v21 }
0x1447   : > { %v3471_v24 = vrot.slane %v3470_v23, 2 }
0x1449   : > { %v3472_v25 = vadd.f32 %v3471_v24, %v3470_v23 }
0x144b   : > { %v3473_v26 = vrot.slane %v3472_v25, 1 }
0x144d   : > { %v3474_v27 = vadd.f32 %v3473_v26, %v3472_v25 }
0x144f   : > { %v3476_v28 = vmul.f32 0.125, %v3474_v27 }
0x1451   : > { %v3477_v30 = vpack.c.bf16 %v3476_v28, %v3476_v28 }
0x1453   : > { %4331 = vmatmul.mubr.msk.bf16.vlgmr.msra.gmra.mrb[104].mxu0 %vm590_vm1, %v3477_v30 }
0x1454   : > { %4336 = vmatprep.mubr.msk.bf16.mxu0 %vm4603_vm0, %v4602_v0  ;;  %4335 = vmatpush3.bf16.msra.mxu0 %v4427_v45 }
0x1526   : > { %v3534_v32 = vpop.f32.mrb[104].mxu0 }
0x1527   : > { %v3535_v33 = vadd.f32 %v3534_v32, %v3495_v20  ;;  %v4332_v34 = vpop.f32.mrb[105].mxu0 }
0x1528   : > { %v3537_v8 = vpop.f32.mrb[106].mxu0 }
0x1529   : > { %v3540_v9 = vmax.f32 %v3535_v33, 0.0  ;;  %v4333_v35 = vpop.f32.mrb[107].mxu0 }
0x152b   : > { %v3541_v37 = vpack.c.bf16 %v3540_v9, %v3540_v9 }
0x152d   : > { %4337 = vmatmul.mubr.msk.bf16.vlgmr.msra.gmra.mrb[108].mxu0 %vm448_vm2, %v3541_v37 }
0x1600   : > { %v3589_v0 = vpop.f32.mrb[108].mxu0 }
0x1601   : > { %v3590_v40 = vadd.f32 %v3589_v0, %v3550_v38  ;;  %v4338_v39 = vpop.f32.mrb[109].mxu0 }
0x1602   : > { %v3592_v41 = vpop.f32.mrb[110].mxu0 }
0x1603   : > { %v4339_v42 = vpop.f32.mrb[111].mxu0  ;;  %3596 = vst.msk [vmem:[%s431_s20] sm:$0x1] %vm3595_vm5, %v3590_v40 }
0x1604   : > { %4539 = shalt.err (!%p4536_p11)
}
0x1605   : > { %s4540_s26 = scalar_lea.hbm %s5443_s18, 16  ;;  %s4544_s19 = scalar_lea.hbm %s5497_s12, 32 }
0x1606   : > { %p4541_p13 = scmp.ne.s32.totalorder %s5443_s18, %s4540_s26  ;;  %p4545_p5 = scmp.lt.u32.totalorder %s5443_s18, %s5497_s12 }
0x1607   : > { %p4546_p9 = scmp.lt.u32.totalorder %s4544_s19, %s4540_s26  ;;  %p4548_p12 = scmp.lt.u32.totalorder %s4540_s26, %s5443_s18 }
0x1608   : > { %p4542_p0 = pnand %p4541_p13, %p5518_p1 }
0x1609   : > { %p4547_p10 = por %p4546_p9, %p4545_p5 }
0x160a   : > { %p4543_p6 = pneg %p4542_p0 }
0x160b   : > { %p4549_p2 = por %p4548_p12, %p4547_p10 }
0x160d   : > { %p4550_p3 = pnand %p4549_p2, %p4543_p6 }
0x160f   : > { %4553 = shalt.err (!%p4550_p3)
}
0x1610   : > { %4348 = dma.vmem_to_hbm [thread:$0]  (%p5518_p1), %s5445_s28, 16, %s5443_s18, %s3598_s25  }
0x1611 PF: > { %s5519_s16 = sld [smem:[#allocation14_spill]]  ;;  %p4365_p4 = scmp.ge.s32.totalorder %s4596_s24, 2 }
0x1612   : > { %s3622_s27 = sand.u32 1, %s4584_s21  }
0x1613   : > { %s3623_s17 = scalar_lea.sflag [#allocation4], %s3622_s27 }
0x1617   : > { %p5520_p7 = scmp.ne.s32.totalorder %s5519_s16, 0 }
0x1619   : > { %p4358_p8 = pnand %p4365_p4, %p5520_p7 }
0x161b   : > { %4579 = dma.done.wait (!%p4358_p8), %s3623_s17, 16  }
0x161c   : > { %4581 = vsyncadd (!%p4358_p8), %s3623_s17, 4294967280  ;;  %s5521_s24 = sld [smem:[#allocation12_spill]]  ;;  %s5522_s14 = sld [smem:[#allocation11_spill]] }
0x161d   : > { %s5523_s23 = sld [smem:[#allocation13_spill]]  ;;  %s5524_s21 = smov %s4588_s22 }
0x1622   : > { %p24_p11 = scmp.ge.s32.totalorder %s5521_s24, 4   ;;  %s5525_s22 = smov %s5522_s14 }
0x1624   :  { %26 = sbr.rel (!%p24_p11) target bundleno = 5 (0x5), region = 118 }
0x162b   :  { %3627 = vsyncpa [#allocation3], 1 }
0x162c   :  { %3629 = vsyncpa [#allocation3 + $0x1], 1 }
0x162d   :  { %3630 = vsyncpa [#allocation6], 1 }
0x162e   :  { %3631 = vsyncpa [#allocation4], 1 }
0x162f   :  { %3633 = vsyncpa [#allocation4 + $0x1], 1 }

</bundles_post_ra>
